<compile_context>
chip_gen: v7x
topology: tpu7x:2x2x1
jax: 0.10.0
libtpu: 0.0.40
codegen_flags: <defaults>
</compile_context>

<pallas_src>
import functools

import jax
import jax.numpy as jnp
from jax.experimental import pallas as pl
from jax.experimental.pallas import tpu as pltpu


def _round_up(x, m):
    return (x + m - 1) // m * m


# ---------------------------------------------------------------------------
# Fused encoder kernel (one grid step == one image)
# ---------------------------------------------------------------------------

def _make_encoder_kernel(num_blocks, H, W, last_tanh):
    S = H * W
    # tap order t = dy*3 + dx ; flat-spatial read offset for tap t
    offsets = [(dy - 1) * W + (dx - 1) for dy in range(3) for dx in range(3)]

    def kernel(*refs):
        it = iter(refs)
        imgs_ref = next(it)       # (1, Cimg_pad, S)   f32
        msgs_ref = next(it)       # (1, Cmsg_pad, 1)   f32
        masks_ref = next(it)      # (9, S)             f32 (1.0 valid / 0.0 pad)
        blocks = [(next(it), next(it), next(it)) for _ in range(num_blocks)]
        w_af_msg = next(it)       # (z, 9*Cmsg_pad)    bf16
        w_af_enc = next(it)       # (z, 9*z)           bf16
        w_af_img = next(it)       # (z, 9*Cimg_pad)    bf16
        s_af = next(it)           # (z, 1) f32
        b_af = next(it)           # (z, 1) f32
        wf_ref = next(it)         # (Cout, z) f32
        bf_ref = next(it)         # (Cout, 1) f32
        o_ref = next(it)          # (1, Cout, S) f32

        masks = masks_ref[...]                              # (9, S)
        mask_rows = [masks[t:t + 1, :] for t in range(9)]   # nine (1, S) rows

        def build_taps(x):
            """x: (C, S) f32 -> (9*C, S) bf16; taps stacked along sublanes."""
            pieces = []
            for t, off in enumerate(offsets):
                shifted = x if off == 0 else pltpu.roll(x, (-off) % S, axis=1)
                # zero the contributions that would come from the pad=1 halo
                piece = shifted if t == 4 else shifted * mask_rows[t]
                pieces.append(piece)
            return jnp.concatenate(pieces, axis=0).astype(jnp.bfloat16)

        def conv_bn_relu(taps, w_ref, s_ref, b_ref):
            # one fat MXU matmul: (Cout, 9*Cin) @ (9*Cin, S) -> f32 (Cout, S)
            acc = jnp.dot(w_ref[...], taps, preferred_element_type=jnp.float32)
            return jnp.maximum(acc * s_ref[...] + b_ref[...], 0.0)

        img = imgs_ref[0]                                   # (Cimg_pad, S)
        img_taps = build_taps(img)                          # reused by after-layer

        # conv_bns stack
        x = conv_bn_relu(img_taps, *blocks[0])
        for i in range(1, num_blocks):
            x = conv_bn_relu(build_taps(x), *blocks[i])

        # after-concat layer: conv(cat([msgs, enc, imgs])) == sum of 3 matmuls
        enc_taps = build_taps(x)
        msgs_col = msgs_ref[0]                              # (Cmsg_pad, 1)
        msg_taps = jnp.concatenate(
            [msgs_col * mask_rows[t] for t in range(9)], axis=0
        ).astype(jnp.bfloat16)                              # (9*Cmsg_pad, S)

        acc = jnp.dot(w_af_msg[...], msg_taps, preferred_element_type=jnp.float32)
        acc = acc + jnp.dot(w_af_enc[...], enc_taps,
                            preferred_element_type=jnp.float32)
        acc = acc + jnp.dot(w_af_img[...], img_taps,
                            preferred_element_type=jnp.float32)
        y = jnp.maximum(acc * s_af[...] + b_af[...], 0.0)   # (z, S) f32

        # final 1x1 conv (+ optional tanh); output is lane-dense (Cout, S)
        out = jnp.dot(wf_ref[...], y, preferred_element_type=jnp.float32)
        out = out + bf_ref[...]
        if last_tanh:
            out = jnp.tanh(out)
        o_ref[0] = out.astype(o_ref.dtype)

    return kernel


# ---------------------------------------------------------------------------
# Wrapper (NCHW in / NCHW out, matching the PyTorch module)
# ---------------------------------------------------------------------------

def _tap_masks(H, W):
    """(9, H*W) validity masks (1.0 inside the image, 0.0 in the pad halo)."""
    y = jnp.arange(H, dtype=jnp.int32)[:, None]
    x = jnp.arange(W, dtype=jnp.int32)[None, :]
    rows = []
    for dy in range(3):
        for dx in range(3):
            oy, ox = dy - 1, dx - 1
            valid = (y + oy >= 0) & (y + oy < H) & (x + ox >= 0) & (x + ox < W)
            rows.append(valid.reshape(-1))
    return jnp.stack(rows, axis=0).astype(jnp.float32)


@functools.partial(jax.jit, static_argnames=("last_tanh",))
def hidden_encoder_forward(imgs_nchw, msgs, params, last_tanh=True):
    N, C, H, W = imgs_nchw.shape
    S = H * W
    num_blocks = len(params["conv_bns"])
    cout = params["final_w"].shape[0]
    cin_pad = params["conv_bns"][0][0].shape[1] // 9
    nb_pad = params["after_w_msg"].shape[1] // 9
    num_bits = msgs.shape[1]

    # NCHW -> (N, C, H*W); zero-pad channel counts to multiples of 8 so all
    # sublane concats inside the kernel are 8-aligned.
    imgs_p = jnp.pad(imgs_nchw.reshape(N, C, S).astype(jnp.float32),
                     ((0, 0), (0, cin_pad - C), (0, 0)))
    msgs_p = jnp.pad(msgs.astype(jnp.float32),
                     ((0, 0), (0, nb_pad - num_bits)))[:, :, None]
    masks = _tap_masks(H, W)

    def full2d(a):
        return pl.BlockSpec(a.shape, lambda n: (0, 0))

    inputs = [imgs_p, msgs_p, masks]
    in_specs = [
        pl.BlockSpec((1, cin_pad, S), lambda n: (n, 0, 0)),
        pl.BlockSpec((1, nb_pad, 1), lambda n: (n, 0, 0)),
        full2d(masks),
    ]
    for (w, s, b) in params["conv_bns"]:
        inputs += [w, s, b]
        in_specs += [full2d(w), full2d(s), full2d(b)]
    tail = [params["after_w_msg"], params["after_w_enc"], params["after_w_img"],
            params["after_scale"], params["after_bias"],
            params["final_w"], params["final_b"]]
    inputs += tail
    in_specs += [full2d(a) for a in tail]

    kernel = _make_encoder_kernel(num_blocks, H, W, last_tanh)

    out_flat = pl.pallas_call(
        kernel,
        out_shape=jax.ShapeDtypeStruct((N, cout, S), jnp.float32),
        grid_spec=pltpu.PrefetchScalarGridSpec(
            num_scalar_prefetch=0,
            grid=(N,),
            in_specs=in_specs,
            out_specs=pl.BlockSpec((1, cout, S), lambda n: (n, 0, 0)),
        ),
        compiler_params=pltpu.CompilerParams(
            dimension_semantics=("parallel",)),
    )(*inputs)

    return out_flat.reshape(N, cout, H, W)


# ---------------------------------------------------------------------------
# Parameter construction (deterministic, synthetic; PyTorch layouts folded)
# ---------------------------------------------------------------------------

def _fold_conv3x3(w_oihw, cin_pad):
    """(Cout, Cin, 3, 3) torch layout -> (Cout, 9*cin_pad) bf16, tap-major."""
    cout, cin = w_oihw.shape[:2]
    w = jnp.pad(w_oihw, ((0, 0), (0, cin_pad - cin), (0, 0), (0, 0)))
    w = jnp.transpose(w, (0, 2, 3, 1)).reshape(cout, 9 * cin_pad)
    return w.astype(jnp.bfloat16)


def _synth_conv_bn(key, cin, cout, eps=1e-5):
    """Synthetic conv+BN params; BN folded in inference mode."""
    kw, kb, kg, kbe, km, kv = jax.random.split(key, 6)
    w = 0.1 * jax.random.normal(kw, (cout, cin, 3, 3), jnp.float32)
    conv_b = 0.05 * jax.random.normal(kb, (cout,), jnp.float32)
    gamma = 1.0 + 0.1 * jax.random.normal(kg, (cout,), jnp.float32)
    beta = 0.1 * jax.random.normal(kbe, (cout,), jnp.float32)
    mean = 0.1 * jax.random.normal(km, (cout,), jnp.float32)
    var = jnp.abs(1.0 + 0.1 * jax.random.normal(kv, (cout,), jnp.float32))
    scale = gamma / jnp.sqrt(var + eps)
    bias = (conv_b - mean) * scale + beta
    return w, scale[:, None].astype(jnp.float32), bias[:, None].astype(jnp.float32)


def make_hidden_encoder_params(key, num_blocks, num_bits, in_channels,
                               out_channels, z_channels):
    if z_channels % 8 != 0:
        # TODO(synk): pad z_channels like the image/message channels if needed.
        raise NotImplementedError("z_channels must be a multiple of 8")
    cin_pad = _round_up(in_channels, 8)
    nb_pad = _round_up(num_bits, 8)

    keys = jax.random.split(key, num_blocks + 2)
    conv_bns = []
    cin, cpad = in_channels, cin_pad
    for i in range(num_blocks):
        w, scale, bias = _synth_conv_bn(keys[i], cin, z_channels)
        conv_bns.append((_fold_conv3x3(w, cpad), scale, bias))
        cin, cpad = z_channels, z_channels

    # after-concat layer: input channels = [msgs | encoded | imgs]
    cat_in = num_bits + z_channels + in_channels
    w_cat, after_scale, after_bias = _synth_conv_bn(keys[num_blocks], cat_in,
                                                    z_channels)
    w_msg = _fold_conv3x3(w_cat[:, :num_bits], nb_pad)
    w_enc = _fold_conv3x3(w_cat[:, num_bits:num_bits + z_channels], z_channels)
    w_img = _fold_conv3x3(w_cat[:, num_bits + z_channels:], cin_pad)

    kf_w, kf_b = jax.random.split(keys[num_blocks + 1])
    final_w = 0.1 * jax.random.normal(kf_w, (out_channels, z_channels),
                                      jnp.float32)
    final_b = 0.05 * jax.random.normal(kf_b, (out_channels, 1), jnp.float32)

    return {
        "conv_bns": conv_bns,
        "after_w_msg": w_msg,
        "after_w_enc": w_enc,
        "after_w_img": w_img,
        "after_scale": after_scale,
        "after_bias": after_bias,
        "final_w": final_w,
        "final_b": final_b,
    }


# ---------------------------------------------------------------------------
# Main
# ---------------------------------------------------------------------------

if __name__ == "__main__":
    # Small HiDDeN config: num_blocks=2, num_bits=8, in=3, out=3, z=32
    num_blocks = 2
    num_bits = 8
    in_channels = 3
    out_channels = 3
    z_channels = 32
    N, H, W = 2, 16, 16

    root = jax.random.PRNGKey(0)
    k_img, k_msg, k_par = jax.random.split(root, 3)

    imgs = jax.random.normal(k_img, (N, in_channels, H, W), jnp.float32)
    msgs = jax.random.bernoulli(k_msg, 0.5, (N, num_bits)).astype(jnp.float32)

    params = make_hidden_encoder_params(
        k_par, num_blocks, num_bits, in_channels, out_channels, z_channels)

    out = hidden_encoder_forward(imgs, msgs, params, last_tanh=True)
    out = jax.block_until_ready(out)

    assert out.shape == (N, out_channels, H, W), out.shape
    assert bool(jnp.all(jnp.isfinite(out)))
    assert bool(jnp.all(jnp.abs(out) <= 1.0))  # tanh range
    print("KERNEL_OK")
</pallas_src>

<mosaic_0001>
module attributes {stable_mosaic.version = 11 : i64} {
  func.func @kernel(%arg0: i32, %arg1: memref<1x8x256xf32, #tpu.memory_space<vmem>>, %arg2: memref<1x8x1xf32, #tpu.memory_space<vmem>>, %arg3: memref<9x256xf32, #tpu.memory_space<vmem>>, %arg4: memref<32x72xbf16, #tpu.memory_space<vmem>>, %arg5: memref<32x1xf32, #tpu.memory_space<vmem>>, %arg6: memref<32x1xf32, #tpu.memory_space<vmem>>, %arg7: memref<32x288xbf16, #tpu.memory_space<vmem>>, %arg8: memref<32x1xf32, #tpu.memory_space<vmem>>, %arg9: memref<32x1xf32, #tpu.memory_space<vmem>>, %arg10: memref<32x72xbf16, #tpu.memory_space<vmem>>, %arg11: memref<32x288xbf16, #tpu.memory_space<vmem>>, %arg12: memref<32x72xbf16, #tpu.memory_space<vmem>>, %arg13: memref<32x1xf32, #tpu.memory_space<vmem>>, %arg14: memref<32x1xf32, #tpu.memory_space<vmem>>, %arg15: memref<3x32xf32, #tpu.memory_space<vmem>>, %arg16: memref<3x1xf32, #tpu.memory_space<vmem>>, %arg17: memref<1x3x256xf32, #tpu.memory_space<vmem>>) attributes {dimension_semantics = [#tpu.dimension_semantics<parallel>], iteration_bounds = array<i64: 2>, scalar_prefetch = 0 : i64, scratch_operands = 0 : i64, tpu.core_type = #tpu.core_type<tc>, window_params = [{transform_indices = @transform_0, window_bounds = array<i64: 1, 8, 256>}, {transform_indices = @transform_1, window_bounds = array<i64: 1, 8, 1>}, {pipeline_mode = #tpu.pipeline_mode<synchronous>, transform_indices = @transform_2, window_bounds = array<i64: 9, 256>}, {pipeline_mode = #tpu.pipeline_mode<synchronous>, transform_indices = @transform_3, window_bounds = array<i64: 32, 72>}, {pipeline_mode = #tpu.pipeline_mode<synchronous>, transform_indices = @transform_4, window_bounds = array<i64: 32, 1>}, {pipeline_mode = #tpu.pipeline_mode<synchronous>, transform_indices = @transform_5, window_bounds = array<i64: 32, 1>}, {pipeline_mode = #tpu.pipeline_mode<synchronous>, transform_indices = @transform_6, window_bounds = array<i64: 32, 288>}, {pipeline_mode = #tpu.pipeline_mode<synchronous>, transform_indices = @transform_7, window_bounds = array<i64: 32, 1>}, {pipeline_mode = #tpu.pipeline_mode<synchronous>, transform_indices = @transform_8, window_bounds = array<i64: 32, 1>}, {pipeline_mode = #tpu.pipeline_mode<synchronous>, transform_indices = @transform_9, window_bounds = array<i64: 32, 72>}, {pipeline_mode = #tpu.pipeline_mode<synchronous>, transform_indices = @transform_10, window_bounds = array<i64: 32, 288>}, {pipeline_mode = #tpu.pipeline_mode<synchronous>, transform_indices = @transform_11, window_bounds = array<i64: 32, 72>}, {pipeline_mode = #tpu.pipeline_mode<synchronous>, transform_indices = @transform_12, window_bounds = array<i64: 32, 1>}, {pipeline_mode = #tpu.pipeline_mode<synchronous>, transform_indices = @transform_13, window_bounds = array<i64: 32, 1>}, {pipeline_mode = #tpu.pipeline_mode<synchronous>, transform_indices = @transform_14, window_bounds = array<i64: 3, 32>}, {pipeline_mode = #tpu.pipeline_mode<synchronous>, transform_indices = @transform_15, window_bounds = array<i64: 3, 1>}, {transform_indices = @transform_16, window_bounds = array<i64: 1, 3, 256>}]} {
    %c0 = arith.constant 0 : index
    %c0_0 = arith.constant 0 : index
    %0 = vector.load %arg3[%c0, %c0_0] : memref<9x256xf32, #tpu.memory_space<vmem>>, vector<9x256xf32>
    %1 = vector.extract_strided_slice %0 {offsets = [0, 0], sizes = [1, 256], strides = [1, 1]} : vector<9x256xf32> to vector<1x256xf32>
    %2 = vector.extract_strided_slice %0 {offsets = [1, 0], sizes = [1, 256], strides = [1, 1]} : vector<9x256xf32> to vector<1x256xf32>
    %3 = vector.extract_strided_slice %0 {offsets = [2, 0], sizes = [1, 256], strides = [1, 1]} : vector<9x256xf32> to vector<1x256xf32>
    %4 = vector.extract_strided_slice %0 {offsets = [3, 0], sizes = [1, 256], strides = [1, 1]} : vector<9x256xf32> to vector<1x256xf32>
    %5 = vector.extract_strided_slice %0 {offsets = [4, 0], sizes = [1, 256], strides = [1, 1]} : vector<9x256xf32> to vector<1x256xf32>
    %6 = vector.extract_strided_slice %0 {offsets = [5, 0], sizes = [1, 256], strides = [1, 1]} : vector<9x256xf32> to vector<1x256xf32>
    %7 = vector.extract_strided_slice %0 {offsets = [6, 0], sizes = [1, 256], strides = [1, 1]} : vector<9x256xf32> to vector<1x256xf32>
    %8 = vector.extract_strided_slice %0 {offsets = [7, 0], sizes = [1, 256], strides = [1, 1]} : vector<9x256xf32> to vector<1x256xf32>
    %9 = vector.extract_strided_slice %0 {offsets = [8, 0], sizes = [1, 256], strides = [1, 1]} : vector<9x256xf32> to vector<1x256xf32>
    %c0_1 = arith.constant 0 : index
    %c0_2 = arith.constant 0 : index
    %c0_3 = arith.constant 0 : index
    %10 = vector.load %arg1[%c0_1, %c0_2, %c0_3] : memref<1x8x256xf32, #tpu.memory_space<vmem>>, vector<1x8x256xf32>
    %11 = vector.shape_cast %10 : vector<1x8x256xf32> to vector<8x256xf32>
    %c17_i32 = arith.constant 17 : i32
    %12 = tpu.dynamic_rotate %11 by %c17_i32 dim 1 : vector<8x256xf32>, i32 -> vector<8x256xf32>
    %13 = vector.broadcast %1 : vector<1x256xf32> to vector<8x256xf32>
    %14 = arith.mulf %12, %13 : vector<8x256xf32>
    %c16_i32 = arith.constant 16 : i32
    %15 = tpu.dynamic_rotate %11 by %c16_i32 dim 1 : vector<8x256xf32>, i32 -> vector<8x256xf32>
    %16 = vector.broadcast %2 : vector<1x256xf32> to vector<8x256xf32>
    %17 = arith.mulf %15, %16 : vector<8x256xf32>
    %c15_i32 = arith.constant 15 : i32
    %18 = tpu.dynamic_rotate %11 by %c15_i32 dim 1 : vector<8x256xf32>, i32 -> vector<8x256xf32>
    %19 = vector.broadcast %3 : vector<1x256xf32> to vector<8x256xf32>
    %20 = arith.mulf %18, %19 : vector<8x256xf32>
    %c1_i32 = arith.constant 1 : i32
    %21 = tpu.dynamic_rotate %11 by %c1_i32 dim 1 : vector<8x256xf32>, i32 -> vector<8x256xf32>
    %22 = vector.broadcast %4 : vector<1x256xf32> to vector<8x256xf32>
    %23 = arith.mulf %21, %22 : vector<8x256xf32>
    %c255_i32 = arith.constant 255 : i32
    %24 = tpu.dynamic_rotate %11 by %c255_i32 dim 1 : vector<8x256xf32>, i32 -> vector<8x256xf32>
    %25 = vector.broadcast %6 : vector<1x256xf32> to vector<8x256xf32>
    %26 = arith.mulf %24, %25 : vector<8x256xf32>
    %c241_i32 = arith.constant 241 : i32
    %27 = tpu.dynamic_rotate %11 by %c241_i32 dim 1 : vector<8x256xf32>, i32 -> vector<8x256xf32>
    %28 = vector.broadcast %7 : vector<1x256xf32> to vector<8x256xf32>
    %29 = arith.mulf %27, %28 : vector<8x256xf32>
    %c240_i32 = arith.constant 240 : i32
    %30 = tpu.dynamic_rotate %11 by %c240_i32 dim 1 : vector<8x256xf32>, i32 -> vector<8x256xf32>
    %31 = vector.broadcast %8 : vector<1x256xf32> to vector<8x256xf32>
    %32 = arith.mulf %30, %31 : vector<8x256xf32>
    %c239_i32 = arith.constant 239 : i32
    %33 = tpu.dynamic_rotate %11 by %c239_i32 dim 1 : vector<8x256xf32>, i32 -> vector<8x256xf32>
    %34 = vector.broadcast %9 : vector<1x256xf32> to vector<8x256xf32>
    %35 = arith.mulf %33, %34 : vector<8x256xf32>
    %36 = tpu.concatenate %14, %17, %20, %23, %11, %26, %29, %32, %35 in 0 : vector<8x256xf32>, vector<8x256xf32>, vector<8x256xf32>, vector<8x256xf32>, vector<8x256xf32>, vector<8x256xf32>, vector<8x256xf32>, vector<8x256xf32>, vector<8x256xf32> -> vector<72x256xf32>
    %37 = arith.truncf %36 : vector<72x256xf32> to vector<72x256xbf16>
    %c0_4 = arith.constant 0 : index
    %c0_5 = arith.constant 0 : index
    %38 = vector.load %arg4[%c0_4, %c0_5] : memref<32x72xbf16, #tpu.memory_space<vmem>>, vector<32x72xbf16>
    %cst = arith.constant dense<0.000000e+00> : vector<32x256xf32>
    %39 = tpu.matmul %38, %37, %cst {dimension_numbers = #tpu.dot_dimension_numbers<[1], [0], [0], [1], [0, 0, 1, 1], [], []>} : vector<32x72xbf16>, vector<72x256xbf16>, vector<32x256xf32> -> vector<32x256xf32>
    %c0_6 = arith.constant 0 : index
    %c0_7 = arith.constant 0 : index
    %40 = vector.load %arg5[%c0_6, %c0_7] : memref<32x1xf32, #tpu.memory_space<vmem>>, vector<32x1xf32>
    %41 = vector.broadcast %40 : vector<32x1xf32> to vector<32x256xf32>
    %42 = arith.mulf %39, %41 : vector<32x256xf32>
    %c0_8 = arith.constant 0 : index
    %c0_9 = arith.constant 0 : index
    %43 = vector.load %arg6[%c0_8, %c0_9] : memref<32x1xf32, #tpu.memory_space<vmem>>, vector<32x1xf32>
    %44 = vector.broadcast %43 : vector<32x1xf32> to vector<32x256xf32>
    %45 = arith.addf %42, %44 : vector<32x256xf32>
    %cst_10 = arith.constant 0.000000e+00 : f32
    %46 = vector.broadcast %cst_10 : f32 to vector<32x256xf32>
    %47 = arith.maximumf %45, %46 : vector<32x256xf32>
    %c17_i32_11 = arith.constant 17 : i32
    %48 = tpu.dynamic_rotate %47 by %c17_i32_11 dim 1 : vector<32x256xf32>, i32 -> vector<32x256xf32>
    %49 = vector.broadcast %1 : vector<1x256xf32> to vector<32x256xf32>
    %50 = arith.mulf %48, %49 : vector<32x256xf32>
    %c16_i32_12 = arith.constant 16 : i32
    %51 = tpu.dynamic_rotate %47 by %c16_i32_12 dim 1 : vector<32x256xf32>, i32 -> vector<32x256xf32>
    %52 = vector.broadcast %2 : vector<1x256xf32> to vector<32x256xf32>
    %53 = arith.mulf %51, %52 : vector<32x256xf32>
    %c15_i32_13 = arith.constant 15 : i32
    %54 = tpu.dynamic_rotate %47 by %c15_i32_13 dim 1 : vector<32x256xf32>, i32 -> vector<32x256xf32>
    %55 = vector.broadcast %3 : vector<1x256xf32> to vector<32x256xf32>
    %56 = arith.mulf %54, %55 : vector<32x256xf32>
    %c1_i32_14 = arith.constant 1 : i32
    %57 = tpu.dynamic_rotate %47 by %c1_i32_14 dim 1 : vector<32x256xf32>, i32 -> vector<32x256xf32>
    %58 = vector.broadcast %4 : vector<1x256xf32> to vector<32x256xf32>
    %59 = arith.mulf %57, %58 : vector<32x256xf32>
    %c255_i32_15 = arith.constant 255 : i32
    %60 = tpu.dynamic_rotate %47 by %c255_i32_15 dim 1 : vector<32x256xf32>, i32 -> vector<32x256xf32>
    %61 = vector.broadcast %6 : vector<1x256xf32> to vector<32x256xf32>
    %62 = arith.mulf %60, %61 : vector<32x256xf32>
    %c241_i32_16 = arith.constant 241 : i32
    %63 = tpu.dynamic_rotate %47 by %c241_i32_16 dim 1 : vector<32x256xf32>, i32 -> vector<32x256xf32>
    %64 = vector.broadcast %7 : vector<1x256xf32> to vector<32x256xf32>
    %65 = arith.mulf %63, %64 : vector<32x256xf32>
    %c240_i32_17 = arith.constant 240 : i32
    %66 = tpu.dynamic_rotate %47 by %c240_i32_17 dim 1 : vector<32x256xf32>, i32 -> vector<32x256xf32>
    %67 = vector.broadcast %8 : vector<1x256xf32> to vector<32x256xf32>
    %68 = arith.mulf %66, %67 : vector<32x256xf32>
    %c239_i32_18 = arith.constant 239 : i32
    %69 = tpu.dynamic_rotate %47 by %c239_i32_18 dim 1 : vector<32x256xf32>, i32 -> vector<32x256xf32>
    %70 = vector.broadcast %9 : vector<1x256xf32> to vector<32x256xf32>
    %71 = arith.mulf %69, %70 : vector<32x256xf32>
    %72 = tpu.concatenate %50, %53, %56, %59, %47, %62, %65, %68, %71 in 0 : vector<32x256xf32>, vector<32x256xf32>, vector<32x256xf32>, vector<32x256xf32>, vector<32x256xf32>, vector<32x256xf32>, vector<32x256xf32>, vector<32x256xf32>, vector<32x256xf32> -> vector<288x256xf32>
    %73 = arith.truncf %72 : vector<288x256xf32> to vector<288x256xbf16>
    %c0_19 = arith.constant 0 : index
    %c0_20 = arith.constant 0 : index
    %74 = vector.load %arg7[%c0_19, %c0_20] : memref<32x288xbf16, #tpu.memory_space<vmem>>, vector<32x288xbf16>
    %cst_21 = arith.constant dense<0.000000e+00> : vector<32x256xf32>
    %75 = tpu.matmul %74, %73, %cst_21 {dimension_numbers = #tpu.dot_dimension_numbers<[1], [0], [0], [1], [0, 0, 1, 1], [], []>} : vector<32x288xbf16>, vector<288x256xbf16>, vector<32x256xf32> -> vector<32x256xf32>
    %c0_22 = arith.constant 0 : index
    %c0_23 = arith.constant 0 : index
    %76 = vector.load %arg8[%c0_22, %c0_23] : memref<32x1xf32, #tpu.memory_space<vmem>>, vector<32x1xf32>
    %77 = vector.broadcast %76 : vector<32x1xf32> to vector<32x256xf32>
    %78 = arith.mulf %75, %77 : vector<32x256xf32>
    %c0_24 = arith.constant 0 : index
    %c0_25 = arith.constant 0 : index
    %79 = vector.load %arg9[%c0_24, %c0_25] : memref<32x1xf32, #tpu.memory_space<vmem>>, vector<32x1xf32>
    %80 = vector.broadcast %79 : vector<32x1xf32> to vector<32x256xf32>
    %81 = arith.addf %78, %80 : vector<32x256xf32>
    %cst_26 = arith.constant 0.000000e+00 : f32
    %82 = vector.broadcast %cst_26 : f32 to vector<32x256xf32>
    %83 = arith.maximumf %81, %82 : vector<32x256xf32>
    %c17_i32_27 = arith.constant 17 : i32
    %84 = tpu.dynamic_rotate %83 by %c17_i32_27 dim 1 : vector<32x256xf32>, i32 -> vector<32x256xf32>
    %85 = vector.broadcast %1 : vector<1x256xf32> to vector<32x256xf32>
    %86 = arith.mulf %84, %85 : vector<32x256xf32>
    %c16_i32_28 = arith.constant 16 : i32
    %87 = tpu.dynamic_rotate %83 by %c16_i32_28 dim 1 : vector<32x256xf32>, i32 -> vector<32x256xf32>
    %88 = vector.broadcast %2 : vector<1x256xf32> to vector<32x256xf32>
    %89 = arith.mulf %87, %88 : vector<32x256xf32>
    %c15_i32_29 = arith.constant 15 : i32
    %90 = tpu.dynamic_rotate %83 by %c15_i32_29 dim 1 : vector<32x256xf32>, i32 -> vector<32x256xf32>
    %91 = vector.broadcast %3 : vector<1x256xf32> to vector<32x256xf32>
    %92 = arith.mulf %90, %91 : vector<32x256xf32>
    %c1_i32_30 = arith.constant 1 : i32
    %93 = tpu.dynamic_rotate %83 by %c1_i32_30 dim 1 : vector<32x256xf32>, i32 -> vector<32x256xf32>
    %94 = vector.broadcast %4 : vector<1x256xf32> to vector<32x256xf32>
    %95 = arith.mulf %93, %94 : vector<32x256xf32>
    %c255_i32_31 = arith.constant 255 : i32
    %96 = tpu.dynamic_rotate %83 by %c255_i32_31 dim 1 : vector<32x256xf32>, i32 -> vector<32x256xf32>
    %97 = vector.broadcast %6 : vector<1x256xf32> to vector<32x256xf32>
    %98 = arith.mulf %96, %97 : vector<32x256xf32>
    %c241_i32_32 = arith.constant 241 : i32
    %99 = tpu.dynamic_rotate %83 by %c241_i32_32 dim 1 : vector<32x256xf32>, i32 -> vector<32x256xf32>
    %100 = vector.broadcast %7 : vector<1x256xf32> to vector<32x256xf32>
    %101 = arith.mulf %99, %100 : vector<32x256xf32>
    %c240_i32_33 = arith.constant 240 : i32
    %102 = tpu.dynamic_rotate %83 by %c240_i32_33 dim 1 : vector<32x256xf32>, i32 -> vector<32x256xf32>
    %103 = vector.broadcast %8 : vector<1x256xf32> to vector<32x256xf32>
    %104 = arith.mulf %102, %103 : vector<32x256xf32>
    %c239_i32_34 = arith.constant 239 : i32
    %105 = tpu.dynamic_rotate %83 by %c239_i32_34 dim 1 : vector<32x256xf32>, i32 -> vector<32x256xf32>
    %106 = vector.broadcast %9 : vector<1x256xf32> to vector<32x256xf32>
    %107 = arith.mulf %105, %106 : vector<32x256xf32>
    %108 = tpu.concatenate %86, %89, %92, %95, %83, %98, %101, %104, %107 in 0 : vector<32x256xf32>, vector<32x256xf32>, vector<32x256xf32>, vector<32x256xf32>, vector<32x256xf32>, vector<32x256xf32>, vector<32x256xf32>, vector<32x256xf32>, vector<32x256xf32> -> vector<288x256xf32>
    %109 = arith.truncf %108 : vector<288x256xf32> to vector<288x256xbf16>
    %c0_35 = arith.constant 0 : index
    %c0_36 = arith.constant 0 : index
    %c0_37 = arith.constant 0 : index
    %110 = vector.load %arg2[%c0_35, %c0_36, %c0_37] : memref<1x8x1xf32, #tpu.memory_space<vmem>>, vector<1x8x1xf32>
    %111 = vector.shape_cast %110 : vector<1x8x1xf32> to vector<8x1xf32>
    %112 = vector.broadcast %111 : vector<8x1xf32> to vector<8x256xf32>
    %113 = vector.broadcast %1 : vector<1x256xf32> to vector<8x256xf32>
    %114 = arith.mulf %112, %113 : vector<8x256xf32>
    %115 = vector.broadcast %111 : vector<8x1xf32> to vector<8x256xf32>
    %116 = vector.broadcast %2 : vector<1x256xf32> to vector<8x256xf32>
    %117 = arith.mulf %115, %116 : vector<8x256xf32>
    %118 = vector.broadcast %111 : vector<8x1xf32> to vector<8x256xf32>
    %119 = vector.broadcast %3 : vector<1x256xf32> to vector<8x256xf32>
    %120 = arith.mulf %118, %119 : vector<8x256xf32>
    %121 = vector.broadcast %111 : vector<8x1xf32> to vector<8x256xf32>
    %122 = vector.broadcast %4 : vector<1x256xf32> to vector<8x256xf32>
    %123 = arith.mulf %121, %122 : vector<8x256xf32>
    %124 = vector.broadcast %111 : vector<8x1xf32> to vector<8x256xf32>
    %125 = vector.broadcast %5 : vector<1x256xf32> to vector<8x256xf32>
    %126 = arith.mulf %124, %125 : vector<8x256xf32>
    %127 = vector.broadcast %111 : vector<8x1xf32> to vector<8x256xf32>
    %128 = vector.broadcast %6 : vector<1x256xf32> to vector<8x256xf32>
    %129 = arith.mulf %127, %128 : vector<8x256xf32>
    %130 = vector.broadcast %111 : vector<8x1xf32> to vector<8x256xf32>
    %131 = vector.broadcast %7 : vector<1x256xf32> to vector<8x256xf32>
    %132 = arith.mulf %130, %131 : vector<8x256xf32>
    %133 = vector.broadcast %111 : vector<8x1xf32> to vector<8x256xf32>
    %134 = vector.broadcast %8 : vector<1x256xf32> to vector<8x256xf32>
    %135 = arith.mulf %133, %134 : vector<8x256xf32>
    %136 = vector.broadcast %111 : vector<8x1xf32> to vector<8x256xf32>
    %137 = vector.broadcast %9 : vector<1x256xf32> to vector<8x256xf32>
    %138 = arith.mulf %136, %137 : vector<8x256xf32>
    %139 = tpu.concatenate %114, %117, %120, %123, %126, %129, %132, %135, %138 in 0 : vector<8x256xf32>, vector<8x256xf32>, vector<8x256xf32>, vector<8x256xf32>, vector<8x256xf32>, vector<8x256xf32>, vector<8x256xf32>, vector<8x256xf32>, vector<8x256xf32> -> vector<72x256xf32>
    %140 = arith.truncf %139 : vector<72x256xf32> to vector<72x256xbf16>
    %c0_38 = arith.constant 0 : index
    %c0_39 = arith.constant 0 : index
    %141 = vector.load %arg10[%c0_38, %c0_39] : memref<32x72xbf16, #tpu.memory_space<vmem>>, vector<32x72xbf16>
    %cst_40 = arith.constant dense<0.000000e+00> : vector<32x256xf32>
    %142 = tpu.matmul %141, %140, %cst_40 {dimension_numbers = #tpu.dot_dimension_numbers<[1], [0], [0], [1], [0, 0, 1, 1], [], []>} : vector<32x72xbf16>, vector<72x256xbf16>, vector<32x256xf32> -> vector<32x256xf32>
    %c0_41 = arith.constant 0 : index
    %c0_42 = arith.constant 0 : index
    %143 = vector.load %arg11[%c0_41, %c0_42] : memref<32x288xbf16, #tpu.memory_space<vmem>>, vector<32x288xbf16>
    %cst_43 = arith.constant dense<0.000000e+00> : vector<32x256xf32>
    %144 = tpu.matmul %143, %109, %cst_43 {dimension_numbers = #tpu.dot_dimension_numbers<[1], [0], [0], [1], [0, 0, 1, 1], [], []>} : vector<32x288xbf16>, vector<288x256xbf16>, vector<32x256xf32> -> vector<32x256xf32>
    %145 = arith.addf %142, %144 : vector<32x256xf32>
    %c0_44 = arith.constant 0 : index
    %c0_45 = arith.constant 0 : index
    %146 = vector.load %arg12[%c0_44, %c0_45] : memref<32x72xbf16, #tpu.memory_space<vmem>>, vector<32x72xbf16>
    %cst_46 = arith.constant dense<0.000000e+00> : vector<32x256xf32>
    %147 = tpu.matmul %146, %37, %cst_46 {dimension_numbers = #tpu.dot_dimension_numbers<[1], [0], [0], [1], [0, 0, 1, 1], [], []>} : vector<32x72xbf16>, vector<72x256xbf16>, vector<32x256xf32> -> vector<32x256xf32>
    %148 = arith.addf %145, %147 : vector<32x256xf32>
    %c0_47 = arith.constant 0 : index
    %c0_48 = arith.constant 0 : index
    %149 = vector.load %arg13[%c0_47, %c0_48] : memref<32x1xf32, #tpu.memory_space<vmem>>, vector<32x1xf32>
    %150 = vector.broadcast %149 : vector<32x1xf32> to vector<32x256xf32>
    %151 = arith.mulf %148, %150 : vector<32x256xf32>
    %c0_49 = arith.constant 0 : index
    %c0_50 = arith.constant 0 : index
    %152 = vector.load %arg14[%c0_49, %c0_50] : memref<32x1xf32, #tpu.memory_space<vmem>>, vector<32x1xf32>
    %153 = vector.broadcast %152 : vector<32x1xf32> to vector<32x256xf32>
    %154 = arith.addf %151, %153 : vector<32x256xf32>
    %cst_51 = arith.constant 0.000000e+00 : f32
    %155 = vector.broadcast %cst_51 : f32 to vector<32x256xf32>
    %156 = arith.maximumf %154, %155 : vector<32x256xf32>
    %c0_52 = arith.constant 0 : index
    %c0_53 = arith.constant 0 : index
    %157 = vector.load %arg15[%c0_52, %c0_53] : memref<3x32xf32, #tpu.memory_space<vmem>>, vector<3x32xf32>
    %cst_54 = arith.constant dense<0.000000e+00> : vector<3x256xf32>
    %158 = tpu.matmul %157, %156, %cst_54 {dimension_numbers = #tpu.dot_dimension_numbers<[1], [0], [0], [1], [0, 0, 1, 1], [], []>} : vector<3x32xf32>, vector<32x256xf32>, vector<3x256xf32> -> vector<3x256xf32>
    %c0_55 = arith.constant 0 : index
    %c0_56 = arith.constant 0 : index
    %159 = vector.load %arg16[%c0_55, %c0_56] : memref<3x1xf32, #tpu.memory_space<vmem>>, vector<3x1xf32>
    %160 = vector.broadcast %159 : vector<3x1xf32> to vector<3x256xf32>
    %161 = arith.addf %158, %160 : vector<3x256xf32>
    %162 = math.tanh %161 : vector<3x256xf32>
    %c0_57 = arith.constant 0 : index
    %c0_58 = arith.constant 0 : index
    %c0_59 = arith.constant 0 : index
    %163 = vector.load %arg17[%c0_57, %c0_58, %c0_59] : memref<1x3x256xf32, #tpu.memory_space<vmem>>, vector<1x3x256xf32>
    %164 = vector.shape_cast %163 : vector<1x3x256xf32> to vector<3x256xf32>
    %165 = vector.shape_cast %162 : vector<3x256xf32> to vector<1x3x256xf32>
    tpu.vector_store %arg17[%c0_57, %c0_58, %c0_59], %165 {strides = array<i32>} : memref<1x3x256xf32, #tpu.memory_space<vmem>>, vector<1x3x256xf32>,
    return
  }
  func.func @transform_0(%arg0: i32) -> (i32, i32, i32) {
    %c0_i32 = arith.constant 0 : i32
    %c0_i32_0 = arith.constant 0 : i32
    %c0_i32_1 = arith.constant 0 : i32
    return %arg0, %c0_i32, %c0_i32_0 : i32, i32, i32
  }
  func.func @transform_1(%arg0: i32) -> (i32, i32, i32) {
    %c0_i32 = arith.constant 0 : i32
    %c0_i32_0 = arith.constant 0 : i32
    %c0_i32_1 = arith.constant 0 : i32
    return %arg0, %c0_i32, %c0_i32_0 : i32, i32, i32
  }
  func.func @transform_2(%arg0: i32) -> (i32, i32) {
    %c0_i32 = arith.constant 0 : i32
    %c0_i32_0 = arith.constant 0 : i32
    %c0_i32_1 = arith.constant 0 : i32
    return %c0_i32, %c0_i32_0 : i32, i32
  }
  func.func @transform_3(%arg0: i32) -> (i32, i32) {
    %c0_i32 = arith.constant 0 : i32
    %c0_i32_0 = arith.constant 0 : i32
    %c0_i32_1 = arith.constant 0 : i32
    return %c0_i32, %c0_i32_0 : i32, i32
  }
  func.func @transform_4(%arg0: i32) -> (i32, i32) {
    %c0_i32 = arith.constant 0 : i32
    %c0_i32_0 = arith.constant 0 : i32
    %c0_i32_1 = arith.constant 0 : i32
    return %c0_i32, %c0_i32_0 : i32, i32
  }
  func.func @transform_5(%arg0: i32) -> (i32, i32) {
    %c0_i32 = arith.constant 0 : i32
    %c0_i32_0 = arith.constant 0 : i32
    %c0_i32_1 = arith.constant 0 : i32
    return %c0_i32, %c0_i32_0 : i32, i32
  }
  func.func @transform_6(%arg0: i32) -> (i32, i32) {
    %c0_i32 = arith.constant 0 : i32
    %c0_i32_0 = arith.constant 0 : i32
    %c0_i32_1 = arith.constant 0 : i32
    return %c0_i32, %c0_i32_0 : i32, i32
  }
  func.func @transform_7(%arg0: i32) -> (i32, i32) {
    %c0_i32 = arith.constant 0 : i32
    %c0_i32_0 = arith.constant 0 : i32
    %c0_i32_1 = arith.constant 0 : i32
    return %c0_i32, %c0_i32_0 : i32, i32
  }
  func.func @transform_8(%arg0: i32) -> (i32, i32) {
    %c0_i32 = arith.constant 0 : i32
    %c0_i32_0 = arith.constant 0 : i32
    %c0_i32_1 = arith.constant 0 : i32
    return %c0_i32, %c0_i32_0 : i32, i32
  }
  func.func @transform_9(%arg0: i32) -> (i32, i32) {
    %c0_i32 = arith.constant 0 : i32
    %c0_i32_0 = arith.constant 0 : i32
    %c0_i32_1 = arith.constant 0 : i32
    return %c0_i32, %c0_i32_0 : i32, i32
  }
  func.func @transform_10(%arg0: i32) -> (i32, i32) {
    %c0_i32 = arith.constant 0 : i32
    %c0_i32_0 = arith.constant 0 : i32
    %c0_i32_1 = arith.constant 0 : i32
    return %c0_i32, %c0_i32_0 : i32, i32
  }
  func.func @transform_11(%arg0: i32) -> (i32, i32) {
    %c0_i32 = arith.constant 0 : i32
    %c0_i32_0 = arith.constant 0 : i32
    %c0_i32_1 = arith.constant 0 : i32
    return %c0_i32, %c0_i32_0 : i32, i32
  }
  func.func @transform_12(%arg0: i32) -> (i32, i32) {
    %c0_i32 = arith.constant 0 : i32
    %c0_i32_0 = arith.constant 0 : i32
    %c0_i32_1 = arith.constant 0 : i32
    return %c0_i32, %c0_i32_0 : i32, i32
  }
  func.func @transform_13(%arg0: i32) -> (i32, i32) {
    %c0_i32 = arith.constant 0 : i32
    %c0_i32_0 = arith.constant 0 : i32
    %c0_i32_1 = arith.constant 0 : i32
    return %c0_i32, %c0_i32_0 : i32, i32
  }
  func.func @transform_14(%arg0: i32) -> (i32, i32) {
    %c0_i32 = arith.constant 0 : i32
    %c0_i32_0 = arith.constant 0 : i32
    %c0_i32_1 = arith.constant 0 : i32
    return %c0_i32, %c0_i32_0 : i32, i32
  }
  func.func @transform_15(%arg0: i32) -> (i32, i32) {
    %c0_i32 = arith.constant 0 : i32
    %c0_i32_0 = arith.constant 0 : i32
    %c0_i32_1 = arith.constant 0 : i32
    return %c0_i32, %c0_i32_0 : i32, i32
  }
  func.func @transform_16(%arg0: i32) -> (i32, i32, i32) {
    %c0_i32 = arith.constant 0 : i32
    %c0_i32_0 = arith.constant 0 : i32
    %c0_i32_1 = arith.constant 0 : i32
    return %arg0, %c0_i32, %c0_i32_0 : i32, i32, i32
  }
}

</mosaic_0001>

<bundles_post_ra>
// kernel: hidden_encoder_forward.1
= control target key start
LH: loop header
LB: loop body
LE: loop exit
PB: predicated region body
PF: predicated region fallthrough
CT: control target
= control target key end

     0   :  { %s2484_s21 = smov 0   ;;  %s3761_s0 = inlined_call_operand.vmem [shape: f32[2,8,256], index: 0, kind: input, shape index: {}]   ;;  %s3762_s1 = inlined_call_operand.vmem [shape: f32[2,8,1], index: 1, kind: input, shape index: {}]   ;;  %s3763_s2 = inlined_call_operand.vmem [shape: f32[9,256], index: 2, kind: input, shape index: {}]   ;;  %s3764_s3 = inlined_call_operand.vmem [shape: bf16[32,72], index: 3, kind: input, shape index: {}]   ;;  %s3765_s4 = inlined_call_operand.vmem [shape: f32[32,1], index: 4, kind: input, shape index: {}]   ;;  %s3766_s5 = inlined_call_operand.vmem [shape: f32[32,1], index: 5, kind: input, shape index: {}]   ;;  %s3767_s6 = inlined_call_operand.vmem [shape: bf16[32,288], index: 6, kind: input, shape index: {}]   ;;  %s3768_s7 = inlined_call_operand.vmem [shape: f32[32,1], index: 7, kind: input, shape index: {}]   ;;  %s3769_s8 = inlined_call_operand.vmem [shape: f32[32,1], index: 8, kind: input, shape index: {}]   ;;  %s3770_s9 = inlined_call_operand.vmem [shape: bf16[32,72], index: 9, kind: input, shape index: {}]   ;;  %s3771_s10 = inlined_call_operand.vmem [shape: bf16[32,288], index: 10, kind: input, shape index: {}]   ;;  %s3772_s11 = inlined_call_operand.vmem [shape: bf16[32,72], index: 11, kind: input, shape index: {}]   ;;  %s3773_s12 = inlined_call_operand.vmem [shape: f32[32,1], index: 12, kind: input, shape index: {}]   ;;  %s3774_s13 = inlined_call_operand.vmem [shape: f32[32,1], index: 13, kind: input, shape index: {}]   ;;  %s3775_s14 = inlined_call_operand.vmem [shape: f32[3,32], index: 14, kind: input, shape index: {}]   ;;  %s3776_s15 = inlined_call_operand.vmem [shape: f32[3,1], index: 15, kind: input, shape index: {}]   ;;  %s3777_s16 = inlined_call_operand.vmem [shape: f32[2,3,256], index: 16, kind: output, shape index: {}]  }
   0x1   :  { %3809 = sst [smem:[#allocation10_spill]] %s3761_s0 }
   0x2 LB: > { %s2233_s22 = sadd.s32 4294967295, %s2387_s21   ;;  %p2237_p0 = scmp.ge.s32.totalorder %s2387_s21, 1  ;;  %s2387_s21 = sphi %s2484_s21, %s26_s21  }
   0x3   : > { %p471_p1 = scmp.lt.s32.totalorder %s2387_s21, 3 }
   0x5   : > { %p472_p2 = pnand %p2237_p0, %p471_p1 }
   0x7   : > { %475 = sbr.rel (%p472_p2) target bundleno = 1625 (0x659), region = 84 }
   0xe   : > { %p525_p3 = scmp.lt.s32.totalorder %s2233_s22, 1  ;;  %s3810_s26 = sld [smem:[#allocation10_spill]]  ;;  %v3792_v2 = vmov 0   ;;  %v776_v3 = vld [vmem:[%s3765_s4 + $0x8] sm:$0xff]  ;;  %v775_v4 = vld [vmem:[%s3765_s4] sm:$0xff]  ;;  %v777_v7 = vld [vmem:[%s3765_s4 + $0x10] sm:$0xff]  ;;  %v550_v11 = vlaneseq }
   0xf   : > { %s3790_s28 = smov 16   ;;  %s2390_s29 = smov 17   ;;  %754 = vmatprep.mubr.bf16.mxu1 %v3792_v2  ;;  %2350 = vset.pattern.permute.xlu1 %v3792_v2  ;;  %v807_v5 = vld [vmem:[%s3766_s5] sm:$0xff]  ;;  %v808_v6 = vld [vmem:[%s3766_s5 + $0x8] sm:$0xff]  ;;  %v778_v8 = vld [vmem:[%s3765_s4 + $0x18] sm:$0xff]  ;;  %vm715_vm8 = vcmask 1043456  }
  0x10   : > { %s3843_s22 = smov (!%p525_p3, %s2233_s22), 1  ;;  %s3788_s30 = smov 15   ;;  %2349 = vset.pattern.permute.xlu0 %v3792_v2  ;;  %v809_v9 = vld [vmem:[%s3766_s5 + $0x10] sm:$0xff]  ;;  %v810_v10 = vld [vmem:[%s3766_s5 + $0x18] sm:$0xff]  ;;  %v2561_v12 = vshrl.u32 %v550_v11, 7  ;;  %v2563_v13 = vand.u32 127, %v550_v11 }
  0x11   : > { %s2279_s23 = sshll.u32 %s3843_s22, 4  ;;  %s3786_s0 = smov 1   ;;  %v2570_v16 = vld [vmem:[%s3763_s2] sm:$0xff]  ;;  %v2575_v17 = vld [vmem:[%s3763_s2 + $0x8] sm:$0xff]  ;;  %vm708_vm9 = vcmask 588800   ;;  %vm1177_vm10 = vcmask 261120  }
  0x12   : > { %s3782_s17 = smov 127   ;;  %s3778_s18 = smov 113   ;;  %3811 = vst [vmem:[#allocation2_spill] sm:$0xff] %v2561_v12  ;;  %v574_v14 = vsub.s32 1, %v2561_v12  ;;  %v557_v15 = vsub.s32 0, %v2561_v12  ;;  %vm569_vm0 = vcmp.lt.s32.totalorder %v2563_v13, 16 }
  0x13   : > { %s3780_s19 = smov 112   ;;  %s3784_s20 = smov 111   ;;  %vm552_vm1 = vcmp.lt.s32.totalorder %v2563_v13, 17  ;;  %v591_v26 = vsub.s32 2, %v2561_v12  ;;  %v608_v27 = vsub.s32 3, %v2561_v12  ;;  %vm586_vm2 = vcmp.lt.s32.totalorder %v2563_v13, 15 }
  0x14   : > { %s529_s27 = scalar_lea.vmem %s3810_s26, %s2279_s23  ;;  %v2580_v20 = vrot.slane %v2570_v16, %v574_v14  ;;  %v2583_v21 = vrot.slane %v2575_v17, %v574_v14  ;;  %v2586_v22 = vrot.slane %v2570_v16, %v557_v15  ;;  %v2589_v23 = vrot.slane %v2575_v17, %v557_v15  ;;  %s3821_s23 = smov 113  }
  0x15   : > { %v2498_v0 = vld [vmem:[%s529_s27] sm:$0xff]  ;;  %v2500_v1 = vld [vmem:[%s529_s27 + $0x8] sm:$0xff]  ;;  %vm603_vm3 = vcmp.lt.s32.totalorder %v2563_v13, 1  ;;  %v625_v40 = vsub.s32 5, %v2561_v12  ;;  %v2613_v41 = vrot.slane %v2570_v16, %v591_v26  ;;  %v2616_v42 = vrot.slane %v2575_v17, %v591_v26  ;;  %s3822_s24 = smov 112   ;;  %s3833_s26 = smov 15  }
  0x16   : > { %565 = vrot.lane.b32.xlu1 %v2498_v0, %s3790_s28  ;;  %546 = vrot.lane.b32.xlu0 %v2498_v0, %s2390_s29  ;;  %v2620_v43 = vrot.slane %v2570_v16, %v608_v27  ;;  %v2623_v44 = vrot.slane %v2575_v17, %v608_v27  ;;  %vm620_vm4 = vcmp.lt.s32.totalorder %v2563_v13, 127  ;;  %v642_v63 = vsub.s32 6, %v2561_v12 }
  0x17   : > { %v2636_v51 = vrot.slane %v2570_v16, %v625_v40  ;;  %v2639_v52 = vrot.slane %v2575_v17, %v625_v40  ;;  %vm637_vm5 = vcmp.lt.s32.totalorder %v2563_v13, 113  ;;  %vm654_vm6 = vcmp.lt.s32.totalorder %v2563_v13, 112 }
  0x18   : > { %v2670_v11 = vrot.slane %v2575_v17, %v642_v63  ;;  %vm671_vm7 = vcmp.lt.s32.totalorder %v2563_v13, 111  ;;  %v2367_v13 = vld [vmem:[%s3771_s10 + $0x8] ss:$12 sps:$4 sm:$0xff]  }
  0x1a   : > { %567 = vrot.lane.b32.xlu1 %v2500_v1, %s3790_s28  ;;  %548 = vrot.lane.b32.xlu0 %v2500_v1, %s2390_s29 }
  0x1e   : > { %584 = vrot.lane.b32.xlu1 %v2500_v1, %s3788_s30  ;;  %582 = vrot.lane.b32.xlu0 %v2498_v0, %s3788_s30 }
  0x22   : > { %601 = vrot.lane.b32.xlu1 %v2500_v1, %s3786_s0  ;;  %599 = vrot.lane.b32.xlu0 %v2498_v0, %s3786_s0 }
  0x26   : > { %618 = vrot.lane.b32.xlu1 %v2500_v1, %s3782_s17  ;;  %616 = vrot.lane.b32.xlu0 %v2498_v0, %s3782_s17 }
  0x2a   : > { %635 = vrot.lane.b32.xlu1 %v2500_v1, %s3778_s18  ;;  %633 = vrot.lane.b32.xlu0 %v2498_v0, %s3778_s18  ;;  %s3823_s18 = smov 111  }
  0x2e   : > { %652 = vrot.lane.b32.xlu1 %v2500_v1, %s3780_s19  ;;  %650 = vrot.lane.b32.xlu0 %v2498_v0, %s3780_s19  ;;  %s3819_s19 = smov 1  }
  0x32   : > { %669 = vrot.lane.b32.xlu1 %v2500_v1, %s3784_s20  ;;  %667 = vrot.lane.b32.xlu0 %v2498_v0, %s3784_s20  ;;  %s3820_s20 = smov 127  }
  0x36   : > { %786 = vperm.xlu1 %2350, %v776_v3   ;;  %781 = vperm.xlu0 %2349, %v775_v4  }
  0x3a   : > { %813 = vperm.xlu1 %2350, %v807_v5   ;;  %818 = vperm.xlu0 %2349, %v808_v6   ;;  %v659_v5 = vsub.s32 7, %v2561_v12 }
  0x3c   : > { %v2675_v14 = vrot.slane %v2570_v16, %v659_v5  ;;  %v2678_v15 = vrot.slane %v2575_v17, %v659_v5 }
  0x3e   : > { %791 = vperm.xlu1 %2350, %v777_v7   ;;  %796 = vperm.xlu0 %2349, %v778_v8  }
  0x42   : > { %823 = vperm.xlu1 %2350, %v809_v9   ;;  %828 = vperm.xlu0 %2349, %v810_v10   ;;  %v2667_v10 = vrot.slane %v2570_v16, %v642_v63 }
  0x88   : > { %v566_v18 = vpop.permute.xlu1 %565  ;;  %v547_v19 = vpop.permute.xlu0 %546 }
  0x8c   : > { %v568_v24 = vpop.permute.xlu1 %567  ;;  %v549_v25 = vpop.permute.xlu0 %548 }
  0x8d   : > { %v570_v28 = vsel %vm569_vm0, %v566_v18, %v568_v24  ;;  %v571_v29 = vsel %vm569_vm0, %v568_v24, %v566_v18  ;;  %v553_v30 = vsel %vm552_vm1, %v547_v19, %v549_v25  ;;  %v554_v31 = vsel %vm552_vm1, %v549_v25, %v547_v19 }
  0x8e   : > { %v580_v32 = vmul.f32 %v2580_v20, %v571_v29  ;;  %v581_v33 = vmul.f32 %v2583_v21, %v570_v28  ;;  %v563_v34 = vmul.f32 %v2586_v22, %v554_v31  ;;  %v564_v35 = vmul.f32 %v2589_v23, %v553_v30  ;;  %v2697_v28 = vld [vmem:[%s3763_s2 + $0x18] ss:$0 sm:$0xff]  ;;  %v2702_v29 = vld [vmem:[%s3763_s2 + $0x10] ss:$0 sm:$0xff] }
  0x90   : > { %v585_v36 = vpop.permute.xlu1 %584  ;;  %v583_v37 = vpop.permute.xlu0 %582  ;;  %v2606_v38 = vpack.c.bf16 %v581_v33, %v564_v35  ;;  %v2608_v39 = vpack.c.bf16 %v580_v32, %v563_v34 }
  0x91   : > { %v587_v45 = vsel %vm586_vm2, %v583_v37, %v585_v36  ;;  %v588_v46 = vsel %vm586_vm2, %v585_v36, %v583_v37 }
  0x92   : > { %722 = vmatprep.subr.bf16.mxu1 %v2606_v38  ;;  %v597_v53 = vmul.f32 %v2613_v41, %v588_v46  ;;  %v598_v54 = vmul.f32 %v2616_v42, %v587_v45 }
  0x93   : > { %723 = vmatpush1.bf16.msra.mxu1 %v2608_v39 }
  0x94   : > { %v602_v47 = vpop.permute.xlu1 %601  ;;  %v600_v48 = vpop.permute.xlu0 %599 }
  0x95   : > { %v604_v49 = vsel %vm603_vm3, %v600_v48, %v602_v47  ;;  %v605_v50 = vsel %vm603_vm3, %v602_v47, %v600_v48  ;;  %v2351_v47 = vld [vmem:[%s3764_s3] sm:$0xff]   ;;  %v2352_v48 = vld [vmem:[%s3764_s3 + $0x8] sm:$0xff]  }
  0x96   : > { %v614_v55 = vmul.f32 %v2620_v43, %v605_v50  ;;  %v615_v56 = vmul.f32 %v2623_v44, %v604_v49 }
  0x98   : > { %v619_v57 = vpop.permute.xlu1 %618  ;;  %v617_v58 = vpop.permute.xlu0 %616  ;;  %v2645_v59 = vpack.c.bf16 %v615_v56, %v598_v54  ;;  %v2647_v60 = vpack.c.bf16 %v614_v55, %v597_v53 }
  0x99   : > { %v621_v61 = vsel %vm620_vm4, %v617_v58, %v619_v57  ;;  %v622_v62 = vsel %vm620_vm4, %v619_v57, %v617_v58 }
  0x9a   : > { %3812 = vst [vmem:[#allocation3_spill] sm:$0xff] %v2647_v60  ;;  %v631_v3 = vmul.f32 %v2636_v51, %v621_v61  ;;  %v632_v4 = vmul.f32 %v2639_v52, %v622_v62  ;;  %724 = vmatprep.subr.bf16.mxu1 %v2645_v59 }
  0x9b   : > { %725 = vmatpush1.bf16.msra.mxu1 %v2647_v60 }
  0x9c   : > { %v636_v6 = vpop.permute.xlu1 %635  ;;  %v634_v7 = vpop.permute.xlu0 %633  ;;  %v2661_v8 = vpack.c.bf16 %v632_v4, %v2500_v1  ;;  %v2664_v9 = vpack.c.bf16 %v631_v3, %v2498_v0 }
  0x9d   : > { %v638_v0 = vsel %vm637_vm5, %v634_v7, %v636_v6  ;;  %v639_v1 = vsel %vm637_vm5, %v636_v6, %v634_v7 }
  0x9e   : > { %3813 = vst [vmem:[#allocation4_spill] sm:$0xff] %v2661_v8  ;;  %3814 = vst [vmem:[#allocation5_spill] sm:$0xff] %v2664_v9  ;;  %726 = vmatprep.subr.bf16.mxu1 %v2661_v8  ;;  %v648_v17 = vmul.f32 %v2667_v10, %v638_v0  ;;  %v649_v25 = vmul.f32 %v2670_v11, %v639_v1 }
  0x9f   : > { %727 = vmatpush1.bf16.msra.mxu1 %v2664_v9 }
  0xa0   : > { %v653_v18 = vpop.permute.xlu1 %652  ;;  %v651_v19 = vpop.permute.xlu0 %650 }
  0xa1   : > { %v655_v24 = vsel %vm654_vm6, %v651_v19, %v653_v18  ;;  %v656_v16 = vsel %vm654_vm6, %v653_v18, %v651_v19 }
  0xa2   : > { %v665_v26 = vmul.f32 %v2675_v14, %v655_v24  ;;  %v666_v27 = vmul.f32 %v2678_v15, %v656_v16 }
  0xa4   : > { %v670_v30 = vpop.permute.xlu1 %669  ;;  %v668_v31 = vpop.permute.xlu0 %667  ;;  %v2704_v32 = vpack.c.bf16 %v666_v27, %v649_v25  ;;  %v2706_v33 = vpack.c.bf16 %v665_v26, %v648_v17 }
  0xa5   : > { %v672_v34 = vsel %vm671_vm7, %v668_v31, %v670_v30  ;;  %v673_v35 = vsel %vm671_vm7, %v670_v30, %v668_v31 }
  0xa6   : > { %3815 = vst [vmem:[#allocation6_spill] sm:$0xff] %v2704_v32  ;;  %3816 = vst [vmem:[#allocation7_spill] sm:$0xff] %v2706_v33  ;;  %v683_v36 = vmul.f32 %v2697_v28, %v673_v35  ;;  %728 = vmatprep.subr.bf16.mxu1 %v2704_v32  ;;  %v682_v37 = vmul.f32 %v2702_v29, %v672_v34 }
  0xa7   : > { %729 = vmatpush1.bf16.msra.mxu1 %v2706_v33 }
  0xa8   : > { %v2716_v40 = vpack.c.bf16 %v683_v36, %v683_v36  ;;  %v692_v45 = vpack.c.bf16 %v682_v37, %v682_v37 }
  0xaa   : > { %3817 = vst [vmem:[#allocation8_spill] sm:$0xff] %v2716_v40  ;;  %2247 = vmatprep.subr.msk.bf16.mxu1 %vm715_vm8, %v2716_v40  ;;  %v2721_v46 = vsel %vm715_vm8, %v692_v45, 0 }
  0xab   : > { %3818 = vst [vmem:[#allocation9_spill] sm:$0xff] %v2721_v46  ;;  %731 = vmatpush1.bf16.msra.mxu1 %v2721_v46 }
  0xae   : > { %2248 = vmatmul.mubr.msk.bf16.vlgmr.msra.gmra.mrb[0].mxu1 %vm708_vm9, %v2351_v47 }
  0xaf   : > { %764 = vmatprep.mubr.bf16.mxu1 %v3792_v2 }
  0xb5   : > { %v787_v49 = vpop.permute.xlu1 %786  ;;  %v782_v50 = vpop.permute.xlu0 %781 }
  0xb6   : > { %2249 = vmatmul.mubr.msk.bf16.gmra.mrb[4].mxu1 %vm708_vm9, %v2352_v48 }
  0xb9   : > { %v814_v56 = vpop.permute.xlu1 %813  ;;  %v819_v63 = vpop.permute.xlu0 %818 }
  0xbd   : > { %v792_v26 = vpop.permute.xlu1 %791  ;;  %v797_v27 = vpop.permute.xlu0 %796 }
  0xc1   : > { %v824_v34 = vpop.permute.xlu1 %823  ;;  %v829_v36 = vpop.permute.xlu0 %828 }
 0x181   : > { %v756_v53 = vpop.f32.mrb[0].mxu1 }
 0x182   : > { %v799_v54 = vmul.f32 %v782_v50, %v756_v53  ;;  %v758_v55 = vpop.f32.mrb[1].mxu1 }
 0x183   : > { %v760_v57 = vpop.f32.mrb[2].mxu1  ;;  %v800_v18 = vmul.f32 %v782_v50, %v758_v55 }
 0x184   : > { %v831_v58 = vadd.f32 %v814_v56, %v799_v54  ;;  %v801_v61 = vmul.f32 %v787_v49, %v760_v57  ;;  %v762_v62 = vpop.f32.mrb[3].mxu1 }
 0x185   : > { %v802_v19 = vmul.f32 %v787_v49, %v762_v62  ;;  %v832_v24 = vadd.f32 %v814_v56, %v800_v18  ;;  %v2355_v56 = vld [vmem:[%s3767_s6 + $0x4] ss:$12 sps:$4 sm:$0xff]  }
 0x186   : > { %v2733_v3 = vmax.f32 %v831_v58, 0.0  ;;  %v833_v4 = vadd.f32 %v819_v63, %v801_v61  ;;  %1216 = vmatprep.mubr.bf16.mxu1 %v2355_v56  ;;  %v1322_v18 = vld [vmem:[%s3769_s8] sm:$0xff] }
 0x187   : > { %v834_v16 = vadd.f32 %v819_v63, %v802_v19  ;;  %v2755_v17 = vmax.f32 %v832_v24, 0.0  ;;  %v1323_v24 = vld [vmem:[%s3769_s8 + $0x8] sm:$0xff] }
 0x188   : > { %v2735_v5 = vmax.f32 %v833_v4, 0.0  ;;  %847 = vrot.lane.b32.xlu1 %v2733_v3, %s2390_s29 }
 0x189   : > { %v766_v6 = vpop.f32.mrb[4].mxu1  ;;  %v2759_v25 = vmax.f32 %v834_v16, 0.0 }
 0x18a   : > { %v768_v7 = vpop.f32.mrb[5].mxu1  ;;  %849 = vrot.lane.b32.xlu0 %v2735_v5, %s2390_s29  ;;  %v803_v30 = vmul.f32 %v792_v26, %v766_v6  ;;  %v1290_v6 = vld [vmem:[%s3768_s7] sm:$0xff] }
 0x18b   : > { %v770_v0 = vpop.f32.mrb[6].mxu1  ;;  %v804_v48 = vmul.f32 %v792_v26, %v768_v7  ;;  %v1292_v26 = vld [vmem:[%s3768_s7 + $0x10] sm:$0xff] }
 0x18c   : > { %v772_v1 = vpop.f32.mrb[7].mxu1  ;;  %879 = vrot.lane.b32.xlu1 %v2733_v3, %s3790_s28  ;;  %v805_v31 = vmul.f32 %v797_v27, %v770_v0  ;;  %v835_v35 = vadd.f32 %v824_v34, %v803_v30  ;;  %v1291_v0 = vld [vmem:[%s3768_s7 + $0x8] sm:$0xff] }
 0x18d   : > { %v806_v49 = vmul.f32 %v797_v27, %v772_v1  ;;  %v836_v50 = vadd.f32 %v824_v34, %v804_v48  ;;  %v1293_v34 = vld [vmem:[%s3768_s7 + $0x18] sm:$0xff]  ;;  %v1324_v48 = vld [vmem:[%s3769_s8 + $0x10] sm:$0xff] }
 0x18e   : > { %881 = vrot.lane.b32.xlu0 %v2735_v5, %s3790_s28  ;;  %v837_v37 = vadd.f32 %v829_v36, %v805_v31  ;;  %v2775_v45 = vmax.f32 %v835_v35, 0.0 }
 0x18f   : > { %v838_v53 = vadd.f32 %v829_v36, %v806_v49  ;;  %v2795_v54 = vmax.f32 %v836_v50, 0.0 }
 0x190   : > { %911 = vrot.lane.b32.xlu1 %v2733_v3, %s3788_s30  ;;  %v2779_v47 = vmax.f32 %v837_v37, 0.0 }
 0x191   : > { %v2799_v55 = vmax.f32 %v838_v53, 0.0 }
 0x192   : > { %913 = vrot.lane.b32.xlu0 %v2735_v5, %s3788_s30 }
 0x194   : > { %943 = vrot.lane.b32.xlu1 %v2733_v3, %s3819_s19 }
 0x196   : > { %945 = vrot.lane.b32.xlu0 %v2735_v5, %s3819_s19 }
 0x198   : > { %975 = vrot.lane.b32.xlu1 %v2733_v3, %s3820_s20 }
 0x19a   : > { %977 = vrot.lane.b32.xlu0 %v2735_v5, %s3820_s20 }
 0x19c   : > { %855 = vrot.lane.b32.xlu1 %v2755_v17, %s2390_s29 }
 0x19e   : > { %857 = vrot.lane.b32.xlu0 %v2759_v25, %s2390_s29 }
 0x1a0   : > { %887 = vrot.lane.b32.xlu1 %v2755_v17, %s3790_s28 }
 0x1a2   : > { %889 = vrot.lane.b32.xlu0 %v2759_v25, %s3790_s28 }
 0x1a4   : > { %919 = vrot.lane.b32.xlu1 %v2755_v17, %s3788_s30 }
 0x1a6   : > { %921 = vrot.lane.b32.xlu0 %v2759_v25, %s3788_s30 }
 0x1a8   : > { %951 = vrot.lane.b32.xlu1 %v2755_v17, %s3819_s19 }
 0x1aa   : > { %953 = vrot.lane.b32.xlu0 %v2759_v25, %s3819_s19 }
 0x1ac   : > { %851 = vrot.lane.b32.xlu1 %v2775_v45, %s2390_s29 }
 0x1ae   : > { %853 = vrot.lane.b32.xlu0 %v2779_v47, %s2390_s29 }
 0x1b0   : > { %883 = vrot.lane.b32.xlu1 %v2775_v45, %s3790_s28 }
 0x1b2   : > { %885 = vrot.lane.b32.xlu0 %v2779_v47, %s3790_s28 }
 0x1b4   : > { %915 = vrot.lane.b32.xlu1 %v2775_v45, %s3788_s30 }
 0x1b6   : > { %917 = vrot.lane.b32.xlu0 %v2779_v47, %s3788_s30 }
 0x1b8   : > { %947 = vrot.lane.b32.xlu1 %v2775_v45, %s3819_s19 }
 0x1ba   : > { %949 = vrot.lane.b32.xlu0 %v2779_v47, %s3819_s19 }
 0x1bc   : > { %859 = vrot.lane.b32.xlu1 %v2795_v54, %s2390_s29 }
 0x1be   : > { %861 = vrot.lane.b32.xlu0 %v2799_v55, %s2390_s29 }
 0x1c0   : > { %983 = vrot.lane.b32.xlu1 %v2755_v17, %s3820_s20 }
 0x1c2   : > { %985 = vrot.lane.b32.xlu0 %v2759_v25, %s3820_s20 }
 0x1c4   : > { %891 = vrot.lane.b32.xlu1 %v2795_v54, %s3790_s28 }
 0x1c6   : > { %893 = vrot.lane.b32.xlu0 %v2799_v55, %s3790_s28  ;;  %s3832_s28 = smov 16  }
 0x1c8   : > { %923 = vrot.lane.b32.xlu1 %v2795_v54, %s3788_s30 }
 0x1ca   : > { %981 = vrot.lane.b32.xlu0 %v2779_v47, %s3820_s20 }
 0x1cc   : > { %955 = vrot.lane.b32.xlu1 %v2795_v54, %s3819_s19 }
 0x1ce   : > { %925 = vrot.lane.b32.xlu0 %v2799_v55, %s3788_s30 }
 0x1d0   : > { %979 = vrot.lane.b32.xlu1 %v2775_v45, %s3820_s20 }
 0x1d2   : > { %1009 = vrot.lane.b32.xlu0 %v2735_v5, %s3821_s23 }
 0x1d4   : > { %987 = vrot.lane.b32.xlu1 %v2795_v54, %s3820_s20 }
 0x1d6   : > { %957 = vrot.lane.b32.xlu0 %v2799_v55, %s3819_s19 }
 0x1d8   : > { %1007 = vrot.lane.b32.xlu1 %v2733_v3, %s3821_s23 }
 0x1da   : > { %1017 = vrot.lane.b32.xlu0 %v2759_v25, %s3821_s23 }
 0x1dc   : > { %1015 = vrot.lane.b32.xlu1 %v2755_v17, %s3821_s23 }
 0x1de   : > { %1013 = vrot.lane.b32.xlu0 %v2779_v47, %s3821_s23 }
 0x1e0   : > { %1011 = vrot.lane.b32.xlu1 %v2775_v45, %s3821_s23 }
 0x1e2   : > { %1041 = vrot.lane.b32.xlu0 %v2735_v5, %s3822_s24 }
 0x1e4   : > { %1019 = vrot.lane.b32.xlu1 %v2795_v54, %s3821_s23 }
 0x1e6   : > { %989 = vrot.lane.b32.xlu0 %v2799_v55, %s3820_s20 }
 0x1e8   : > { %1039 = vrot.lane.b32.xlu1 %v2733_v3, %s3822_s24 }
 0x1ea   : > { %1049 = vrot.lane.b32.xlu0 %v2759_v25, %s3822_s24 }
 0x1ec   : > { %1047 = vrot.lane.b32.xlu1 %v2755_v17, %s3822_s24 }
 0x1ee   : > { %1021 = vrot.lane.b32.xlu0 %v2799_v55, %s3821_s23 }
 0x1f0   : > { %1043 = vrot.lane.b32.xlu1 %v2775_v45, %s3822_s24 }
 0x1f2   : > { %1045 = vrot.lane.b32.xlu0 %v2779_v47, %s3822_s24 }
 0x1f4   : > { %1051 = vrot.lane.b32.xlu1 %v2795_v54, %s3822_s24 }
 0x1f6   : > { %1053 = vrot.lane.b32.xlu0 %v2799_v55, %s3822_s24 }
 0x1f8   : > { %1071 = vrot.lane.b32.xlu1 %v2733_v3, %s3823_s18 }
 0x1fa   : > { %v848_v57 = vpop.permute.xlu1 %847  ;;  %1073 = vrot.lane.b32.xlu0 %v2735_v5, %s3823_s18 }
 0x1fc   : > { %1079 = vrot.lane.b32.xlu1 %v2755_v17, %s3823_s18  ;;  %v850_v58 = vpop.permute.xlu0 %849 }
 0x1fe   : > { %v2870_v61 = vpop.permute.xlu1 %879  ;;  %1081 = vrot.lane.b32.xlu0 %v2759_v25, %s3823_s18 }
 0x200   : > { %1075 = vrot.lane.b32.xlu1 %v2775_v45, %s3823_s18  ;;  %v882_v62 = vpop.permute.xlu0 %881 }
 0x202   : > { %v2876_v63 = vpop.permute.xlu1 %911  ;;  %1077 = vrot.lane.b32.xlu0 %v2779_v47, %s3823_s18 }
 0x204   : > { %1083 = vrot.lane.b32.xlu1 %v2795_v54, %s3823_s18  ;;  %v2882_v4 = vpop.permute.xlu0 %913 }
 0x206   : > { %v2887_v7 = vpop.permute.xlu1 %943  ;;  %1085 = vrot.lane.b32.xlu0 %v2799_v55, %s3823_s18 }
 0x208   : > { %1296 = vperm.xlu1 %2350, %v1290_v6   ;;  %v2894_v1 = vpop.permute.xlu0 %945  ;;  %v1325_v6 = vld [vmem:[%s3769_s8 + $0x18] sm:$0xff] }
 0x20a   : > { %v2899_v19 = vpop.permute.xlu1 %975  ;;  %1301 = vperm.xlu0 %2349, %v1291_v0  }
 0x20c   : > { %1328 = vperm.xlu1 %2350, %v1322_v18   ;;  %v2904_v16 = vpop.permute.xlu0 %977 }
 0x20e   : > { %v856_v27 = vpop.permute.xlu1 %855  ;;  %1333 = vperm.xlu0 %2349, %v1323_v24  }
 0x20f   : > { %v863_v30 = vsel %vm552_vm1, %v848_v57, %v856_v27  ;;  %v867_v31 = vsel %vm552_vm1, %v856_v27, %v848_v57 }
 0x210   : > { %1306 = vperm.xlu1 %2350, %v1292_v26   ;;  %v858_v35 = vpop.permute.xlu0 %857  ;;  %v871_v49 = vmul.f32 %v867_v31, %v2586_v22  ;;  %v872_v50 = vmul.f32 %v863_v30, %v2589_v23 }
 0x211   : > { %v864_v36 = vsel %vm552_vm1, %v850_v58, %v858_v35  ;;  %v868_v37 = vsel %vm552_vm1, %v858_v35, %v850_v58 }
 0x212   : > { %v873_v53 = vmul.f32 %v868_v37, %v2586_v22  ;;  %v874_v56 = vmul.f32 %v864_v36, %v2589_v23  ;;  %v888_v57 = vpop.permute.xlu1 %887  ;;  %1311 = vperm.xlu0 %2349, %v1293_v34  }
 0x214   : > { %v1103_v0 = vpack.c.bf16 %v873_v53, %v871_v49  ;;  %1338 = vperm.xlu1 %2350, %v1324_v48   ;;  %v890_v58 = vpop.permute.xlu0 %889  ;;  %v1104_v18 = vpack.c.bf16 %v874_v56, %v872_v50 }
 0x215   : > { %v896_v50 = vsel %vm569_vm0, %v882_v62, %v890_v58  ;;  %v900_v12 = vsel %vm569_vm0, %v890_v58, %v882_v62  ;;  %v899_v62 = vsel %vm569_vm0, %v888_v57, %v2870_v61 }
 0x216   : > { %v920_v24 = vpop.permute.xlu1 %919  ;;  %1343 = vperm.xlu0 %2349, %v1325_v6   ;;  %1184 = vmatprep.subr.bf16.mxu1 %v1104_v18  ;;  %v906_v46 = vmul.f32 %v896_v50, %v2583_v21  ;;  %v905_v50 = vmul.f32 %v900_v12, %v2580_v20 }
 0x217   : > { %1185 = vmatpush1.bf16.msra.mxu1 %v1103_v0  ;;  %v895_v0 = vsel %vm569_vm0, %v2870_v61, %v888_v57 }
 0x218   : > { %v922_v26 = vpop.permute.xlu0 %921  ;;  %v904_v58 = vmul.f32 %v895_v0, %v2583_v21 }
 0x219   : > { %v932_v0 = vsel %vm586_vm2, %v922_v26, %v2882_v4 }
 0x21a   : > { %v2930_v27 = vpop.permute.xlu1 %951 }
 0x21c   : > { %v2932_v30 = vpop.permute.xlu0 %953 }
 0x21e   : > { %v852_v31 = vpop.permute.xlu1 %851 }
 0x220   : > { %v854_v35 = vpop.permute.xlu0 %853 }
 0x222   : > { %v884_v34 = vpop.permute.xlu1 %883 }
 0x224   : > { %v886_v36 = vpop.permute.xlu0 %885 }
 0x226   : > { %v916_v37 = vpop.permute.xlu1 %915 }
 0x228   : > { %v2934_v2 = vpop.permute.xlu0 %917 }
 0x22a   : > { %v2936_v49 = vpop.permute.xlu1 %947 }
 0x22c   : > { %v2938_v48 = vpop.permute.xlu0 %949 }
 0x22e   : > { %v860_v53 = vpop.permute.xlu1 %859 }
 0x22f   : > { %v865_v56 = vsel %vm552_vm1, %v852_v31, %v860_v53  ;;  %v869_v6 = vsel %vm552_vm1, %v860_v53, %v852_v31 }
 0x230   : > { %v862_v18 = vpop.permute.xlu0 %861  ;;  %v875_v32 = vmul.f32 %v869_v6, %v2586_v22  ;;  %v876_v31 = vmul.f32 %v865_v56, %v2589_v23  ;;  %v903_v56 = vmul.f32 %v899_v62, %v2580_v20 }
 0x231   : > { %v866_v40 = vsel %vm552_vm1, %v854_v35, %v862_v18  ;;  %v870_v33 = vsel %vm552_vm1, %v862_v18, %v854_v35  ;;  %v1108_v18 = vpack.c.bf16 %v906_v46, %v904_v58 }
 0x232   : > { %v877_v53 = vmul.f32 %v870_v33, %v2586_v22  ;;  %v878_v9 = vmul.f32 %v866_v40, %v2589_v23  ;;  %v2960_v8 = vpop.permute.xlu1 %983  ;;  %v928_v33 = vsel %vm586_vm2, %v2882_v4, %v922_v26  ;;  %v1107_v12 = vpack.c.bf16 %v905_v50, %v903_v56 }
 0x233   : > { %v938_v46 = vmul.f32 %v928_v33, %v2616_v42  ;;  %v931_v4 = vsel %vm586_vm2, %v920_v24, %v2876_v63 }
 0x234   : > { %v1105_v60 = vpack.c.bf16 %v877_v53, %v875_v32  ;;  %v2967_v35 = vpop.permute.xlu0 %985  ;;  %v1106_v6 = vpack.c.bf16 %v878_v9, %v876_v31  ;;  %v927_v9 = vsel %vm586_vm2, %v2876_v63, %v920_v24 }
 0x235   : > { %v936_v26 = vmul.f32 %v927_v9, %v2616_v42  ;;  %v959_v9 = vsel %vm603_vm3, %v2887_v7, %v2930_v27 }
 0x236   : > { %v892_v40 = vpop.permute.xlu1 %891  ;;  %1186 = vmatprep.subr.bf16.mxu1 %v1106_v6  ;;  %v937_v6 = vmul.f32 %v932_v0, %v2613_v41  ;;  %v964_v0 = vsel %vm603_vm3, %v2932_v30, %v2894_v1 }
 0x237   : > { %v897_v61 = vsel %vm569_vm0, %v884_v34, %v892_v40  ;;  %v901_v57 = vsel %vm569_vm0, %v892_v40, %v884_v34  ;;  %1187 = vmatpush1.bf16.msra.mxu1 %v1105_v60  ;;  %v935_v40 = vmul.f32 %v931_v4, %v2613_v41 }
 0x238   : > { %1188 = vmatprep.subr.bf16.mxu1 %v1108_v18  ;;  %v894_v32 = vpop.permute.xlu0 %893  ;;  %v907_v60 = vmul.f32 %v901_v57, %v2580_v20  ;;  %v908_v53 = vmul.f32 %v897_v61, %v2583_v21  ;;  %v960_v18 = vsel %vm603_vm3, %v2894_v1, %v2932_v30  ;;  %v1112_v57 = vpack.c.bf16 %v938_v46, %v936_v26 }
 0x239   : > { %v898_v31 = vsel %vm569_vm0, %v886_v36, %v894_v32  ;;  %v902_v34 = vsel %vm569_vm0, %v894_v32, %v886_v36  ;;  %v970_v46 = vmul.f32 %v960_v18, %v2623_v44  ;;  %v963_v1 = vsel %vm603_vm3, %v2930_v27, %v2887_v7 }
 0x23a   : > { %v909_v62 = vmul.f32 %v902_v34, %v2580_v20  ;;  %v910_v58 = vmul.f32 %v898_v31, %v2583_v21  ;;  %v924_v50 = vpop.permute.xlu1 %923  ;;  %v968_v30 = vmul.f32 %v959_v9, %v2623_v44  ;;  %v969_v26 = vmul.f32 %v964_v0, %v2620_v43 }
 0x23b   : > { %1189 = vmatpush1.bf16.msra.mxu1 %v1107_v12  ;;  %v929_v63 = vsel %vm586_vm2, %v916_v37, %v924_v50  ;;  %v933_v24 = vsel %vm586_vm2, %v924_v50, %v916_v37  ;;  %v1111_v12 = vpack.c.bf16 %v937_v6, %v935_v40 }
 0x23c   : > { %v1109_v56 = vpack.c.bf16 %v909_v62, %v907_v60  ;;  %v2997_v36 = vpop.permute.xlu0 %981  ;;  %v1110_v33 = vpack.c.bf16 %v910_v58, %v908_v53  ;;  %v939_v34 = vmul.f32 %v933_v24, %v2613_v41  ;;  %v940_v60 = vmul.f32 %v929_v63, %v2616_v42 }
 0x23e   : > { %v956_v61 = vpop.permute.xlu1 %955  ;;  %1190 = vmatprep.subr.bf16.mxu1 %v1110_v33  ;;  %v967_v33 = vmul.f32 %v963_v1, %v2620_v43  ;;  %v1122_v1 = vpack.c.bf16 %v2799_v55, %v2795_v54 }
 0x23f   : > { %1191 = vmatpush1.bf16.msra.mxu1 %v1109_v56  ;;  %v1116_v56 = vpack.c.bf16 %v970_v46, %v968_v30  ;;  %v961_v40 = vsel %vm603_vm3, %v2936_v49, %v956_v61  ;;  %v965_v7 = vsel %vm603_vm3, %v956_v61, %v2936_v49  ;;  %v991_v30 = vsel %vm620_vm4, %v2899_v19, %v2960_v8 }
 0x240   : > { %1192 = vmatprep.subr.bf16.mxu1 %v1112_v57  ;;  %v926_v32 = vpop.permute.xlu0 %925  ;;  %v1115_v18 = vpack.c.bf16 %v969_v26, %v967_v33  ;;  %v971_v24 = vmul.f32 %v965_v7, %v2620_v43  ;;  %v999_v54 = vmul.f32 %v991_v30, %v2636_v51 }
 0x241   : > { %v930_v37 = vsel %vm586_vm2, %v2934_v2, %v926_v32  ;;  %v934_v31 = vsel %vm586_vm2, %v926_v32, %v2934_v2 }
 0x242   : > { %v941_v53 = vmul.f32 %v934_v31, %v2613_v41  ;;  %v942_v62 = vmul.f32 %v930_v37, %v2616_v42  ;;  %v980_v58 = vpop.permute.xlu1 %979  ;;  %v1120_v31 = vpack.c.bf16 %v2759_v25, %v2755_v17  ;;  %v1119_v17 = vpack.c.bf16 %v2735_v5, %v2733_v3 }
 0x243   : > { %1193 = vmatpush1.bf16.msra.mxu1 %v1111_v12  ;;  %v972_v12 = vmul.f32 %v961_v40, %v2623_v44  ;;  %v1121_v5 = vpack.c.bf16 %v2779_v47, %v2775_v45 }
 0x244   : > { %v1113_v50 = vpack.c.bf16 %v941_v53, %v939_v34  ;;  %v3032_v4 = vpop.permute.xlu0 %1009  ;;  %v1114_v2 = vpack.c.bf16 %v942_v62, %v940_v60  ;;  %v995_v60 = vsel %vm620_vm4, %v2960_v8, %v2899_v19  ;;  %v992_v53 = vsel %vm620_vm4, %v2904_v16, %v2967_v35 }
 0x246   : > { %v988_v6 = vpop.permute.xlu1 %987  ;;  %1194 = vmatprep.subr.bf16.mxu1 %v1114_v2  ;;  %v1001_v2 = vmul.f32 %v992_v53, %v2636_v51 }
 0x247   : > { %1195 = vmatpush1.bf16.msra.mxu1 %v1113_v50  ;;  %v1000_v50 = vmul.f32 %v995_v60, %v2639_v52  ;;  %v993_v3 = vsel %vm620_vm4, %v980_v58, %v988_v6  ;;  %v997_v8 = vsel %vm620_vm4, %v988_v6, %v980_v58 }
 0x248   : > { %1196 = vmatprep.subr.bf16.mxu1 %v1116_v56  ;;  %v958_v27 = vpop.permute.xlu0 %957  ;;  %v1123_v26 = vpack.c.bf16 %v1001_v2, %v999_v54  ;;  %v1003_v56 = vmul.f32 %v993_v3, %v2636_v51  ;;  %v1004_v40 = vmul.f32 %v997_v8, %v2639_v52 }
 0x249   : > { %v962_v57 = vsel %vm603_vm3, %v2938_v48, %v958_v27  ;;  %v966_v63 = vsel %vm603_vm3, %v958_v27, %v2938_v48  ;;  %v996_v48 = vsel %vm620_vm4, %v2967_v35, %v2904_v16 }
 0x24a   : > { %v973_v9 = vmul.f32 %v966_v63, %v2620_v43  ;;  %v974_v49 = vmul.f32 %v962_v57, %v2623_v44  ;;  %v1008_v61 = vpop.permute.xlu1 %1007  ;;  %v1002_v25 = vmul.f32 %v996_v48, %v2639_v52 }
 0x24b   : > { %1197 = vmatpush1.bf16.msra.mxu1 %v1115_v18 }
 0x24c   : > { %v1117_v32 = vpack.c.bf16 %v973_v9, %v971_v24  ;;  %v1018_v0 = vpop.permute.xlu0 %1017  ;;  %v1118_v46 = vpack.c.bf16 %v974_v49, %v972_v12  ;;  %v1124_v35 = vpack.c.bf16 %v1002_v25, %v1000_v50 }
 0x24d   : > { %v1028_v45 = vsel %vm637_vm5, %v1018_v0, %v3032_v4  ;;  %v1024_v63 = vsel %vm637_vm5, %v3032_v4, %v1018_v0 }
 0x24e   : > { %v1016_v37 = vpop.permute.xlu1 %1015  ;;  %1198 = vmatprep.subr.bf16.mxu1 %v1118_v46  ;;  %v1034_v24 = vmul.f32 %v1028_v45, %v2670_v11 }
 0x24f   : > { %1199 = vmatpush1.bf16.msra.mxu1 %v1117_v32  ;;  %v1027_v19 = vsel %vm637_vm5, %v1016_v37, %v1008_v61  ;;  %v1023_v47 = vsel %vm637_vm5, %v1008_v61, %v1016_v37  ;;  %v1033_v32 = vmul.f32 %v1024_v63, %v2667_v10 }
 0x250   : > { %1200 = vmatprep.subr.bf16.mxu1 %v1120_v31  ;;  %v1014_v34 = vpop.permute.xlu0 %1013  ;;  %v1032_v7 = vmul.f32 %v1027_v19, %v2670_v11  ;;  %v1031_v12 = vmul.f32 %v1023_v47, %v2667_v10 }
 0x252   : > { %v1012_v62 = vpop.permute.xlu1 %1011  ;;  %v1128_v31 = vpack.c.bf16 %v1034_v24, %v1032_v7  ;;  %v1127_v0 = vpack.c.bf16 %v1033_v32, %v1031_v12  ;;  %v2356_v32 = vld [vmem:[%s3767_s6 + $0x1c] ss:$12 sps:$4 sm:$0xff]  }
 0x253   : > { %1201 = vmatpush1.bf16.msra.mxu1 %v1119_v17 }
 0x254   : > { %1202 = vmatprep.subr.bf16.mxu1 %v1122_v1  ;;  %v1042_v16 = vpop.permute.xlu0 %1041 }
 0x256   : > { %v1020_v55 = vpop.permute.xlu1 %1019 }
 0x257   : > { %1203 = vmatpush1.bf16.msra.mxu1 %v1121_v5  ;;  %v1025_v61 = vsel %vm637_vm5, %v1012_v62, %v1020_v55  ;;  %v1029_v46 = vsel %vm637_vm5, %v1020_v55, %v1012_v62 }
 0x258   : > { %1204 = vmatprep.subr.bf16.mxu1 %v1124_v35  ;;  %v990_v33 = vpop.permute.xlu0 %989  ;;  %v1035_v48 = vmul.f32 %v1025_v61, %v2667_v10  ;;  %v1036_v53 = vmul.f32 %v1029_v46, %v2670_v11 }
 0x259   : > { %v994_v58 = vsel %vm620_vm4, %v2997_v36, %v990_v33  ;;  %v998_v6 = vsel %vm620_vm4, %v990_v33, %v2997_v36 }
 0x25a   : > { %v1005_v27 = vmul.f32 %v994_v58, %v2636_v51  ;;  %v1006_v18 = vmul.f32 %v998_v6, %v2639_v52  ;;  %v1040_v57 = vpop.permute.xlu1 %1039 }
 0x25b   : > { %1205 = vmatpush1.bf16.msra.mxu1 %v1123_v26 }
 0x25c   : > { %v1125_v9 = vpack.c.bf16 %v1005_v27, %v1003_v56  ;;  %v1050_v36 = vpop.permute.xlu0 %1049  ;;  %v1126_v49 = vpack.c.bf16 %v1006_v18, %v1004_v40 }
 0x25d   : > { %v1060_v17 = vsel %vm654_vm6, %v1050_v36, %v1042_v16  ;;  %v1056_v5 = vsel %vm654_vm6, %v1042_v16, %v1050_v36  ;;  %v2353_v36 = vld [vmem:[%s3767_s6] ss:$12 sps:$4 sm:$0xff]  }
 0x25e   : > { %v1048_v37 = vpop.permute.xlu1 %1047  ;;  %1206 = vmatprep.subr.bf16.mxu1 %v1126_v49  ;;  %v1066_v54 = vmul.f32 %v1060_v17, %v2678_v15  ;;  %v1065_v56 = vmul.f32 %v1056_v5, %v2675_v14 }
 0x25f   : > { %v1059_v4 = vsel %vm654_vm6, %v1048_v37, %v1040_v57  ;;  %1207 = vmatpush1.bf16.msra.mxu1 %v1125_v9  ;;  %v1055_v1 = vsel %vm654_vm6, %v1040_v57, %v1048_v37 }
 0x260   : > { %1208 = vmatprep.subr.bf16.mxu1 %v1128_v31  ;;  %v1022_v60 = vpop.permute.xlu0 %1021  ;;  %v1064_v30 = vmul.f32 %v1059_v4, %v2678_v15 }
 0x261   : > { %v1026_v25 = vsel %vm637_vm5, %v1014_v34, %v1022_v60  ;;  %v1030_v62 = vsel %vm637_vm5, %v1022_v60, %v1014_v34  ;;  %v1063_v34 = vmul.f32 %v1055_v1, %v2675_v14 }
 0x262   : > { %v1037_v50 = vmul.f32 %v1026_v25, %v2667_v10  ;;  %v1038_v2 = vmul.f32 %v1030_v62, %v2670_v11  ;;  %v1044_v3 = vpop.permute.xlu1 %1043  ;;  %v1132_v26 = vpack.c.bf16 %v1066_v54, %v1064_v30  ;;  %v2358_v30 = vld [vmem:[%s3767_s6 + $0x18] ss:$12 sps:$4 sm:$0xff]  }
 0x263   : > { %1209 = vmatpush1.bf16.msra.mxu1 %v1127_v0  ;;  %v1131_v47 = vpack.c.bf16 %v1065_v56, %v1063_v34 }
 0x264   : > { %v1129_v55 = vpack.c.bf16 %v1037_v50, %v1035_v48  ;;  %v1046_v35 = vpop.permute.xlu0 %1045  ;;  %v1130_v8 = vpack.c.bf16 %v1038_v2, %v1036_v53 }
 0x266   : > { %v1052_v19 = vpop.permute.xlu1 %1051  ;;  %1210 = vmatprep.subr.bf16.mxu1 %v1130_v8 }
 0x267   : > { %v1057_v33 = vsel %vm654_vm6, %v1044_v3, %v1052_v19  ;;  %v1061_v45 = vsel %vm654_vm6, %v1052_v19, %v1044_v3  ;;  %1211 = vmatpush1.bf16.msra.mxu1 %v1129_v55  ;;  %v3824_v19 = vmov 0  }
 0x268   : > { %1212 = vmatprep.subr.bf16.mxu1 %v1132_v26  ;;  %v1054_v16 = vpop.permute.xlu0 %1053  ;;  %v1067_v40 = vmul.f32 %v1057_v33, %v2675_v14  ;;  %v1068_v7 = vmul.f32 %v1061_v45, %v2678_v15  ;;  %v2359_v33 = vld [vmem:[%s3767_s6 + $0x8] ss:$12 sps:$4 sm:$0xff]  }
 0x269   : > { %v1058_v58 = vsel %vm654_vm6, %v1046_v35, %v1054_v16  ;;  %v1062_v6 = vsel %vm654_vm6, %v1054_v16, %v1046_v35  ;;  %v3826_v45 = vld [vmem:[#allocation4_spill] sm:$0xff]  ;;  %v3827_v16 = vld [vmem:[#allocation5_spill] sm:$0xff] }
 0x26a   : > { %v1069_v27 = vmul.f32 %v1058_v58, %v2675_v14  ;;  %v1070_v18 = vmul.f32 %v1062_v6, %v2678_v15  ;;  %v1072_v57 = vpop.permute.xlu1 %1071  ;;  %v3829_v58 = vld [vmem:[#allocation7_spill] sm:$0xff]  ;;  %v3830_v6 = vld [vmem:[#allocation8_spill] sm:$0xff] }
 0x26b   : > { %1213 = vmatpush1.bf16.msra.mxu1 %v1131_v47  ;;  %v3828_v47 = vld [vmem:[#allocation6_spill] sm:$0xff] }
 0x26c   : > { %v1133_v63 = vpack.c.bf16 %v1069_v27, %v1067_v40  ;;  %v1074_v24 = vpop.permute.xlu0 %1073  ;;  %v1134_v12 = vpack.c.bf16 %v1070_v18, %v1068_v7  ;;  %v3831_v40 = vld [vmem:[#allocation9_spill] sm:$0xff] }
 0x26e   : > { %v1080_v9 = vpop.permute.xlu1 %1079  ;;  %1214 = vmatprep.subr.bf16.mxu1 %v1134_v12 }
 0x26f   : > { %v1087_v49 = vsel %vm671_vm7, %v1072_v57, %v1080_v9  ;;  %v1091_v61 = vsel %vm671_vm7, %v1080_v9, %v1072_v57  ;;  %1215 = vmatpush1.bf16.msra.mxu1 %v1133_v63 }
 0x270   : > { %v1082_v46 = vpop.permute.xlu0 %1081  ;;  %v1095_v4 = vmul.f32 %v2702_v29, %v1087_v49  ;;  %v1096_v0 = vmul.f32 %v2697_v28, %v1091_v61 }
 0x271   : > { %v1088_v37 = vsel %vm671_vm7, %v1074_v24, %v1082_v46  ;;  %v1092_v31 = vsel %vm671_vm7, %v1082_v46, %v1074_v24 }
 0x272   : > { %v1097_v48 = vmul.f32 %v2702_v29, %v1088_v37  ;;  %v1098_v60 = vmul.f32 %v2697_v28, %v1092_v31  ;;  %v1076_v53 = vpop.permute.xlu1 %1075  ;;  %1217 = vmatmul.mubr.bf16.vlgmr.msra.gmra.mrb[8].mxu1 %v2353_v36 }
 0x273   : > { %1226 = vmatprep.mubr.bf16.mxu1 %v2356_v32 }
 0x274   : > { %v1135_v17 = vpack.c.bf16 %v1097_v48, %v1095_v4  ;;  %v1078_v25 = vpop.permute.xlu0 %1077  ;;  %v1136_v62 = vpack.c.bf16 %v1098_v60, %v1096_v0 }
 0x276   : > { %v1084_v1 = vpop.permute.xlu1 %1083  ;;  %1237 = vmatprep.subr.bf16.mxu1 %v1136_v62 }
 0x277   : > { %v1089_v50 = vsel %vm671_vm7, %v1076_v53, %v1084_v1  ;;  %v1093_v2 = vsel %vm671_vm7, %v1084_v1, %v1076_v53  ;;  %1238 = vmatpush1.bf16.msra.mxu1 %v1135_v17 }
 0x278   : > { %v1086_v3 = vpop.permute.xlu0 %1085  ;;  %v1099_v55 = vmul.f32 %v2702_v29, %v1089_v50  ;;  %v1100_v35 = vmul.f32 %v2697_v28, %v1093_v2 }
 0x279   : > { %v1090_v5 = vsel %vm671_vm7, %v1078_v25, %v1086_v3  ;;  %v1094_v54 = vsel %vm671_vm7, %v1086_v3, %v1078_v25 }
 0x27a   : > { %v1101_v8 = vmul.f32 %v2702_v29, %v1090_v5  ;;  %v1102_v34 = vmul.f32 %v2697_v28, %v1094_v54  ;;  %1227 = vmatmul.mubr.bf16.gmra.mrb[12].mxu1 %v2358_v30  ;;  %v2360_v28 = vld [vmem:[%s3767_s6 + $0x20] ss:$12 sps:$4 sm:$0xff]  }
 0x27b   : > { %1269 = vmatprep.mubr.bf16.mxu1 %v3824_v19  ;;  %v3825_v29 = vld [vmem:[#allocation3_spill] sm:$0xff] }
 0x27c   : > { %v1137_v26 = vpack.c.bf16 %v1101_v8, %v1099_v55  ;;  %v1138_v56 = vpack.c.bf16 %v1102_v34, %v1100_v35 }
 0x27e   : > { %1239 = vmatprep.subr.bf16.mxu1 %v1138_v56 }
 0x27f   : > { %1240 = vmatpush1.bf16.msra.mxu1 %v1137_v26 }
 0x280   : > { %2289 = vmatprep.subr.bf16.mxu1 %v2606_v38 }
 0x282   : > { %2256 = vmatmul.mubr.msk.bf16.vlgmr.msra.gmra.mrb[8].mxu1 %vm1177_vm10, %v2359_v33 }
 0x283   : > { %2294 = vmatpush1.bf16.msra.mxu1 %v2608_v39  ;;  %1279 = vmatprep.mubr.bf16.mxu1 %v3824_v19 }
 0x284   : > { %2290 = vmatprep.subr.bf16.mxu1 %v2645_v59 }
 0x287   : > { %2295 = vmatpush1.bf16.msra.mxu1 %v3825_v29  ;;  %v1297_v7 = vpop.permute.xlu1 %1296 }
 0x288   : > { %2291 = vmatprep.subr.bf16.mxu1 %v3826_v45 }
 0x289   : > { %v1302_v27 = vpop.permute.xlu0 %1301 }
 0x28a   : > { %2257 = vmatmul.mubr.msk.bf16.gmra.mrb[12].mxu1 %vm1177_vm10, %v2360_v28 }
 0x28b   : > { %2296 = vmatpush1.bf16.msra.mxu1 %v3827_v16  ;;  %1987 = vmatprep.mubr.bf16.mxu1 %v3824_v19  ;;  %v1329_v24 = vpop.permute.xlu1 %1328 }
 0x28c   : > { %2292 = vmatprep.subr.bf16.mxu1 %v3828_v47 }
 0x28d   : > { %v1334_v61 = vpop.permute.xlu0 %1333 }
 0x28f   : > { %2297 = vmatpush1.bf16.msra.mxu1 %v3829_v58  ;;  %v1307_v50 = vpop.permute.xlu1 %1306 }
 0x290   : > { %2293 = vmatprep.subr.msk.bf16.mxu1 %vm715_vm8, %v3830_v6 }
 0x291   : > { %v1312_v30 = vpop.permute.xlu0 %1311 }
 0x293   : > { %2298 = vmatpush1.bf16.msra.mxu1 %v3831_v40  ;;  %v1339_v55 = vpop.permute.xlu1 %1338 }
 0x295   : > { %v1344_v5 = vpop.permute.xlu0 %1343 }
 0x355   : > { %v1271_v18 = vpop.f32.mrb[8].mxu1 }
 0x356   : > { %v1314_v57 = vmul.f32 %v1297_v7, %v1271_v18  ;;  %v1273_v63 = vpop.f32.mrb[9].mxu1  ;;  %v2363_v18 = vld [vmem:[%s3771_s10 + $0x4] ss:$12 sps:$4 sm:$0xff]  }
 0x357   : > { %v1275_v12 = vpop.f32.mrb[10].mxu1  ;;  %v1315_v60 = vmul.f32 %v1297_v7, %v1273_v63  ;;  %1776 = vmatprep.mubr.bf16.mxu0 %v2363_v18 }
 0x358   : > { %v1346_v9 = vadd.f32 %v1329_v24, %v1314_v57  ;;  %v1316_v36 = vmul.f32 %v1302_v27, %v1275_v12  ;;  %v1277_v49 = vpop.f32.mrb[11].mxu1 }
 0x359   : > { %v1317_v53 = vmul.f32 %v1302_v27, %v1277_v49  ;;  %v1347_v17 = vadd.f32 %v1329_v24, %v1315_v60 }
 0x35a   : > { %v3199_v32 = vmax.f32 %v1346_v9, 0.0  ;;  %v1348_v46 = vadd.f32 %v1334_v61, %v1316_v36 }
 0x35b   : > { %v1349_v25 = vadd.f32 %v1334_v61, %v1317_v53  ;;  %v3221_v62 = vmax.f32 %v1347_v17, 0.0  ;;  %v2039_v53 = vld [vmem:[%s3774_s13 + $0x8] sm:$0xff] }
 0x35c   : > { %v3201_v37 = vmax.f32 %v1348_v46, 0.0  ;;  %1362 = vrot.lane.b32.xlu1 %v3199_v32, %s2390_s29  ;;  %v2006_v46 = vld [vmem:[%s3773_s12] sm:$0xff] }
 0x35d   : > { %v1281_v31 = vpop.f32.mrb[12].mxu1  ;;  %v3225_v1 = vmax.f32 %v1349_v25, 0.0 }
 0x35e   : > { %v1283_v4 = vpop.f32.mrb[13].mxu1  ;;  %1364 = vrot.lane.b32.xlu0 %v3201_v37, %s2390_s29  ;;  %v1318_v3 = vmul.f32 %v1307_v50, %v1281_v31 }
 0x35f   : > { %v1285_v0 = vpop.f32.mrb[14].mxu1  ;;  %v1319_v56 = vmul.f32 %v1307_v50, %v1283_v4  ;;  %v2007_v4 = vld [vmem:[%s3773_s12 + $0x8] sm:$0xff]  ;;  %v2008_v50 = vld [vmem:[%s3773_s12 + $0x10] sm:$0xff] }
 0x360   : > { %1394 = vrot.lane.b32.xlu1 %v3199_v32, %s3832_s28  ;;  %v1287_v48 = vpop.f32.mrb[15].mxu1  ;;  %v1320_v2 = vmul.f32 %v1312_v30, %v1285_v0  ;;  %v1350_v35 = vadd.f32 %v1339_v55, %v1318_v3 }
 0x361   : > { %v1321_v26 = vmul.f32 %v1312_v30, %v1287_v48  ;;  %v1351_v28 = vadd.f32 %v1339_v55, %v1319_v56  ;;  %v2038_v48 = vld [vmem:[%s3774_s13] sm:$0xff] }
 0x362   : > { %1396 = vrot.lane.b32.xlu0 %v3201_v37, %s3832_s28  ;;  %v1352_v54 = vadd.f32 %v1344_v5, %v1320_v2  ;;  %v3247_v34 = vmax.f32 %v1350_v35, 0.0 }
 0x363   : > { %v1353_v33 = vadd.f32 %v1344_v5, %v1321_v26  ;;  %v3267_v27 = vmax.f32 %v1351_v28, 0.0  ;;  %v2040_v28 = vld [vmem:[%s3774_s13 + $0x10] sm:$0xff] }
 0x364   : > { %1426 = vrot.lane.b32.xlu1 %v3199_v32, %s3833_s26  ;;  %v3243_v8 = vmax.f32 %v1352_v54, 0.0  ;;  %v2009_v54 = vld [vmem:[%s3773_s12 + $0x18] sm:$0xff] }
 0x365   : > { %v3263_v7 = vmax.f32 %v1353_v33, 0.0 }
 0x366   : > { %1428 = vrot.lane.b32.xlu0 %v3201_v37, %s3833_s26 }
 0x368   : > { %1458 = vrot.lane.b32.xlu1 %v3199_v32, %s3819_s19 }
 0x36a   : > { %1460 = vrot.lane.b32.xlu0 %v3201_v37, %s3819_s19 }
 0x36c   : > { %1490 = vrot.lane.b32.xlu1 %v3199_v32, %s3820_s20 }
 0x36e   : > { %1492 = vrot.lane.b32.xlu0 %v3201_v37, %s3820_s20 }
 0x370   : > { %1370 = vrot.lane.b32.xlu1 %v3221_v62, %s2390_s29 }
 0x372   : > { %1372 = vrot.lane.b32.xlu0 %v3225_v1, %s2390_s29 }
 0x374   : > { %1402 = vrot.lane.b32.xlu1 %v3221_v62, %s3832_s28 }
 0x376   : > { %1404 = vrot.lane.b32.xlu0 %v3225_v1, %s3832_s28 }
 0x378   : > { %1434 = vrot.lane.b32.xlu1 %v3221_v62, %s3833_s26 }
 0x37a   : > { %1436 = vrot.lane.b32.xlu0 %v3225_v1, %s3833_s26 }
 0x37c   : > { %1466 = vrot.lane.b32.xlu1 %v3221_v62, %s3819_s19 }
 0x37e   : > { %1468 = vrot.lane.b32.xlu0 %v3225_v1, %s3819_s19 }
 0x380   : > { %1498 = vrot.lane.b32.xlu1 %v3221_v62, %s3820_s20 }
 0x382   : > { %1368 = vrot.lane.b32.xlu0 %v3243_v8, %s2390_s29 }
 0x384   : > { %1366 = vrot.lane.b32.xlu1 %v3247_v34, %s2390_s29 }
 0x386   : > { %1400 = vrot.lane.b32.xlu0 %v3243_v8, %s3832_s28 }
 0x388   : > { %1398 = vrot.lane.b32.xlu1 %v3247_v34, %s3832_s28 }
 0x38a   : > { %1432 = vrot.lane.b32.xlu0 %v3243_v8, %s3833_s26 }
 0x38c   : > { %1430 = vrot.lane.b32.xlu1 %v3247_v34, %s3833_s26 }
 0x38e   : > { %1464 = vrot.lane.b32.xlu0 %v3243_v8, %s3819_s19 }
 0x390   : > { %1462 = vrot.lane.b32.xlu1 %v3247_v34, %s3819_s19 }
 0x392   : > { %1376 = vrot.lane.b32.xlu0 %v3263_v7, %s2390_s29 }
 0x394   : > { %1374 = vrot.lane.b32.xlu1 %v3267_v27, %s2390_s29 }
 0x396   : > { %1500 = vrot.lane.b32.xlu0 %v3225_v1, %s3820_s20 }
 0x398   : > { %1406 = vrot.lane.b32.xlu1 %v3267_v27, %s3832_s28 }
 0x39a   : > { %1408 = vrot.lane.b32.xlu0 %v3263_v7, %s3832_s28 }
 0x39c   : > { %1438 = vrot.lane.b32.xlu1 %v3267_v27, %s3833_s26 }
 0x39e   : > { %1496 = vrot.lane.b32.xlu0 %v3243_v8, %s3820_s20 }
 0x3a0   : > { %1470 = vrot.lane.b32.xlu1 %v3267_v27, %s3819_s19 }
 0x3a2   : > { %1440 = vrot.lane.b32.xlu0 %v3263_v7, %s3833_s26 }
 0x3a4   : > { %1494 = vrot.lane.b32.xlu1 %v3247_v34, %s3820_s20 }
 0x3a6   : > { %1524 = vrot.lane.b32.xlu0 %v3201_v37, %s3821_s23 }
 0x3a8   : > { %1502 = vrot.lane.b32.xlu1 %v3267_v27, %s3820_s20 }
 0x3aa   : > { %1472 = vrot.lane.b32.xlu0 %v3263_v7, %s3819_s19 }
 0x3ac   : > { %1522 = vrot.lane.b32.xlu1 %v3199_v32, %s3821_s23 }
 0x3ae   : > { %1532 = vrot.lane.b32.xlu0 %v3225_v1, %s3821_s23 }
 0x3b0   : > { %1530 = vrot.lane.b32.xlu1 %v3221_v62, %s3821_s23 }
 0x3b2   : > { %1528 = vrot.lane.b32.xlu0 %v3243_v8, %s3821_s23 }
 0x3b4   : > { %1526 = vrot.lane.b32.xlu1 %v3247_v34, %s3821_s23 }
 0x3b6   : > { %1556 = vrot.lane.b32.xlu0 %v3201_v37, %s3822_s24 }
 0x3b8   : > { %1534 = vrot.lane.b32.xlu1 %v3267_v27, %s3821_s23 }
 0x3ba   : > { %1504 = vrot.lane.b32.xlu0 %v3263_v7, %s3820_s20  ;;  %s2240_s20 = sshll.u32 %s3843_s22, 3 }
 0x3bb   : > { %s533_s0 = scalar_lea.vmem %s3762_s1, %s2240_s20 }
 0x3bc   : > { %1554 = vrot.lane.b32.xlu1 %v3199_v32, %s3822_s24  ;;  %v1654_v24 = vld [vmem:[%s533_s0] sm:$0xff] }
 0x3be   : > { %1564 = vrot.lane.b32.xlu0 %v3225_v1, %s3822_s24 }
 0x3c0   : > { %1562 = vrot.lane.b32.xlu1 %v3221_v62, %s3822_s24 }
 0x3c2   : > { %1536 = vrot.lane.b32.xlu0 %v3263_v7, %s3821_s23 }
 0x3c4   : > { %1558 = vrot.lane.b32.xlu1 %v3247_v34, %s3822_s24 }
 0x3c6   : > { %1560 = vrot.lane.b32.xlu0 %v3243_v8, %s3822_s24 }
 0x3c8   : > { %1566 = vrot.lane.b32.xlu1 %v3267_v27, %s3822_s24 }
 0x3ca   : > { %1568 = vrot.lane.b32.xlu0 %v3263_v7, %s3822_s24  ;;  %s538_s24 = scalar_lea.vmem %s3777_s16, %s2240_s20 }
 0x3cc   : > { %1586 = vrot.lane.b32.xlu1 %v3199_v32, %s3823_s18 }
 0x3ce   : > { %v1363_v57 = vpop.permute.xlu1 %1362  ;;  %1588 = vrot.lane.b32.xlu0 %v3201_v37, %s3823_s18 }
 0x3d0   : > { %1594 = vrot.lane.b32.xlu1 %v3221_v62, %s3823_s18  ;;  %v1365_v63 = vpop.permute.xlu0 %1364 }
 0x3d2   : > { %v3342_v12 = vpop.permute.xlu1 %1394  ;;  %1596 = vrot.lane.b32.xlu0 %v3225_v1, %s3823_s18 }
 0x3d4   : > { %1657 = vperm.xlu1 %2350, %v1654_v24   ;;  %v3346_v9 = vpop.permute.xlu0 %1396  ;;  %v2041_v24 = vld [vmem:[%s3774_s13 + $0x18] sm:$0xff] }
 0x3d6   : > { %v3348_v36 = vpop.permute.xlu1 %1426  ;;  %1590 = vrot.lane.b32.xlu0 %v3247_v34, %s3823_s18 }
 0x3d8   : > { %1592 = vrot.lane.b32.xlu1 %v3243_v8, %s3823_s18  ;;  %v3354_v49 = vpop.permute.xlu0 %1428 }
 0x3da   : > { %v3356_v61 = vpop.permute.xlu1 %1458  ;;  %1598 = vrot.lane.b32.xlu0 %v3267_v27, %s3823_s18 }
 0x3dc   : > { %1600 = vrot.lane.b32.xlu1 %v3263_v7, %s3823_s18  ;;  %v3365_v31 = vpop.permute.xlu0 %1460 }
 0x3de   : > { %v1491_v0 = vpop.permute.xlu1 %1490  ;;  %2012 = vperm.xlu0 %2349, %v2006_v46  }
 0x3e0   : > { %2017 = vperm.xlu1 %2350, %v2007_v4   ;;  %v3373_v60 = vpop.permute.xlu0 %1492  ;;  %v2079_v4 = vld [vmem:[%s3776_s15] sm:$0x7] }
 0x3e2   : > { %v1371_v17 = vpop.permute.xlu1 %1370  ;;  %2044 = vperm.xlu0 %2349, %v2038_v48  }
 0x3e3   : > { %v1378_v25 = vsel %vm552_vm1, %v1363_v57, %v1371_v17  ;;  %v1382_v30 = vsel %vm552_vm1, %v1371_v17, %v1363_v57 }
 0x3e4   : > { %2049 = vperm.xlu1 %2350, %v2039_v53   ;;  %v1373_v2 = vpop.permute.xlu0 %1372  ;;  %v1386_v55 = vmul.f32 %v1382_v30, %v2586_v22  ;;  %v1387_v56 = vmul.f32 %v1378_v25, %v2589_v23 }
 0x3e5   : > { %v1379_v3 = vsel %vm552_vm1, %v1365_v63, %v1373_v2  ;;  %v1383_v5 = vsel %vm552_vm1, %v1373_v2, %v1365_v63 }
 0x3e6   : > { %v1388_v35 = vmul.f32 %v1383_v5, %v2586_v22  ;;  %v1403_v26 = vpop.permute.xlu1 %1402  ;;  %2022 = vperm.xlu0 %2349, %v2008_v50   ;;  %v1389_v33 = vmul.f32 %v1379_v3, %v2589_v23 }
 0x3e8   : > { %2027 = vperm.xlu1 %2350, %v2009_v54   ;;  %v1405_v18 = vpop.permute.xlu0 %1404  ;;  %v1619_v57 = vpack.c.bf16 %v1389_v33, %v1387_v56  ;;  %v1618_v63 = vpack.c.bf16 %v1388_v35, %v1386_v55  ;;  %v2371_v35 = vld [vmem:[%s3772_s11 + $0x8] sm:$0xff]   ;;  %v1410_v33 = vsel %vm569_vm0, %v3342_v12, %v1403_v26 }
 0x3e9   : > { %2275 = vmatmul.mubr.msk.bf16.vlgmr.msra.gmra.mrb[16].mxu1 %vm708_vm9, %v2371_v35  ;;  %v1419_v40 = vmul.f32 %v1410_v33, %v2583_v21  ;;  %v1415_v47 = vsel %vm569_vm0, %v1405_v18, %v3346_v9 }
 0x3ea   : > { %v3402_v46 = vpop.permute.xlu1 %1434  ;;  %2054 = vperm.xlu0 %2349, %v2040_v28   ;;  %1744 = vmatprep.subr.bf16.mxu0 %v1619_v57  ;;  %v1411_v28 = vsel %vm569_vm0, %v3346_v9, %v1405_v18 }
 0x3eb   : > { %1745 = vmatpush1.bf16.msra.mxu0 %v1618_v63  ;;  %v1421_v16 = vmul.f32 %v1411_v28, %v2583_v21 }
 0x3ec   : > { %2059 = vperm.xlu1 %2350, %v2041_v24   ;;  %v3407_v48 = vpop.permute.xlu0 %1436 }
 0x3ed   : > { %v1623_v29 = vpack.c.bf16 %v1421_v16, %v1419_v40 }
 0x3ee   : > { %v3409_v53 = vpop.permute.xlu1 %1466  ;;  %2082 = vperm.xlu0 %2349, %v2079_v4   ;;  %v1414_v4 = vsel %vm569_vm0, %v1403_v26, %v3342_v12 }
 0x3f0   : > { %v3411_v17 = vpop.permute.xlu0 %1468 }
 0x3f2   : > { %v1499_v25 = vpop.permute.xlu1 %1498 }
 0x3f3   : > { %v1506_v35 = vsel %vm620_vm4, %v1491_v0, %v1499_v25  ;;  %v1510_v6 = vsel %vm620_vm4, %v1499_v25, %v1491_v0 }
 0x3f4   : > { %v1369_v30 = vpop.permute.xlu0 %1368  ;;  %v3456_v45 = vmul.f32 %v1506_v35, %v2636_v51  ;;  %v3459_v9 = vmul.f32 %v1510_v6, %v2639_v52  ;;  %v1420_v6 = vmul.f32 %v1415_v47, %v2580_v20 }
 0x3f6   : > { %v1367_v50 = vpop.permute.xlu1 %1366 }
 0x3f8   : > { %v1401_v2 = vpop.permute.xlu0 %1400 }
 0x3fa   : > { %v1399_v3 = vpop.permute.xlu1 %1398 }
 0x3fc   : > { %v3413_v5 = vpop.permute.xlu0 %1432 }
 0x3fe   : > { %v3415_v54 = vpop.permute.xlu1 %1430 }
 0x400   : > { %v3417_v55 = vpop.permute.xlu0 %1464 }
 0x402   : > { %v3422_v56 = vpop.permute.xlu1 %1462 }
 0x404   : > { %v1377_v57 = vpop.permute.xlu0 %1376 }
 0x405   : > { %v1381_v63 = vsel %vm552_vm1, %v1369_v30, %v1377_v57  ;;  %v1385_v24 = vsel %vm552_vm1, %v1377_v57, %v1369_v30 }
 0x406   : > { %v1375_v58 = vpop.permute.xlu1 %1374  ;;  %v1392_v26 = vmul.f32 %v1385_v24, %v2586_v22  ;;  %v1393_v33 = vmul.f32 %v1381_v63, %v2589_v23 }
 0x407   : > { %v1380_v30 = vsel %vm552_vm1, %v1367_v50, %v1375_v58  ;;  %v1384_v12 = vsel %vm552_vm1, %v1375_v58, %v1367_v50 }
 0x408   : > { %v1390_v57 = vmul.f32 %v1384_v12, %v2586_v22  ;;  %v1391_v0 = vmul.f32 %v1380_v30, %v2589_v23  ;;  %v1501_v25 = vpop.permute.xlu0 %1500 }
 0x409   : > { %v1507_v18 = vsel %vm620_vm4, %v3373_v60, %v1501_v25  ;;  %v1511_v58 = vsel %vm620_vm4, %v1501_v25, %v3373_v60 }
 0x40a   : > { %v3468_v50 = vmul.f32 %v1507_v18, %v2636_v51  ;;  %v3471_v28 = vmul.f32 %v1511_v58, %v2639_v52  ;;  %v1407_v63 = vpop.permute.xlu1 %1406  ;;  %v1621_v24 = vpack.c.bf16 %v1393_v33, %v1391_v0  ;;  %v1620_v35 = vpack.c.bf16 %v1392_v26, %v1390_v57 }
 0x40b   : > { %v1412_v30 = vsel %vm569_vm0, %v1399_v3, %v1407_v63  ;;  %v1418_v18 = vmul.f32 %v1414_v4, %v2580_v20  ;;  %v1443_v26 = vsel %vm586_vm2, %v3354_v49, %v3407_v48  ;;  %v1416_v16 = vsel %vm569_vm0, %v1407_v63, %v1399_v3 }
 0x40c   : > { %1746 = vmatprep.subr.bf16.mxu0 %v1621_v24  ;;  %v1409_v12 = vpop.permute.xlu0 %1408  ;;  %v1639_v60 = vpack.c.bf16 %v3471_v28, %v3459_v9  ;;  %v1638_v25 = vpack.c.bf16 %v3468_v50, %v3456_v45  ;;  %v1423_v40 = vmul.f32 %v1412_v30, %v2583_v21  ;;  %v1442_v0 = vsel %vm586_vm2, %v3348_v36, %v3402_v46 }
 0x40d   : > { %v1413_v47 = vsel %vm569_vm0, %v1401_v2, %v1409_v12  ;;  %v1417_v33 = vsel %vm569_vm0, %v1409_v12, %v1401_v2  ;;  %1747 = vmatpush1.bf16.msra.mxu0 %v1620_v35  ;;  %v1622_v24 = vpack.c.bf16 %v1420_v6, %v1418_v18  ;;  %v1447_v2 = vsel %vm586_vm2, %v3407_v48, %v3354_v49 }
 0x40e   : > { %v1425_v57 = vmul.f32 %v1413_v47, %v2583_v21  ;;  %v1439_v4 = vpop.permute.xlu1 %1438  ;;  %1748 = vmatprep.subr.bf16.mxu0 %v1623_v29  ;;  %v1424_v58 = vmul.f32 %v1417_v33, %v2580_v20  ;;  %v1453_v3 = vmul.f32 %v1443_v26, %v2616_v42  ;;  %v1422_v29 = vmul.f32 %v1416_v16, %v2580_v20 }
 0x40f   : > { %v1446_v30 = vsel %vm586_vm2, %v3402_v46, %v3348_v36  ;;  %v1451_v6 = vmul.f32 %v1442_v0, %v2616_v42  ;;  %v1452_v18 = vmul.f32 %v1447_v2, %v2613_v41  ;;  %v1444_v49 = vsel %vm586_vm2, %v3415_v54, %v1439_v4 }
 0x410   : > { %v3503_v63 = vpop.permute.xlu0 %1496  ;;  %v1625_v35 = vpack.c.bf16 %v1425_v57, %v1423_v40  ;;  %v1624_v48 = vpack.c.bf16 %v1424_v58, %v1422_v29  ;;  %v1450_v33 = vmul.f32 %v1446_v30, %v2613_v41  ;;  %v1475_v36 = vsel %vm603_vm3, %v3365_v31, %v3411_v17 }
 0x411   : > { %1749 = vmatpush1.bf16.msra.mxu0 %v1622_v24  ;;  %v1627_v47 = vpack.c.bf16 %v1453_v3, %v1451_v6  ;;  %v1448_v40 = vsel %vm586_vm2, %v1439_v4, %v3415_v54  ;;  %v1455_v57 = vmul.f32 %v1444_v49, %v2616_v42  ;;  %v1474_v24 = vsel %vm603_vm3, %v3356_v61, %v3409_v53 }
 0x412   : > { %v1471_v12 = vpop.permute.xlu1 %1470  ;;  %1750 = vmatprep.subr.bf16.mxu0 %v1625_v35  ;;  %v1626_v3 = vpack.c.bf16 %v1452_v18, %v1450_v33  ;;  %v1485_v54 = vmul.f32 %v1475_v36, %v2623_v44  ;;  %v1454_v29 = vmul.f32 %v1448_v40, %v2613_v41  ;;  %v1478_v30 = vsel %vm603_vm3, %v3409_v53, %v3356_v61 }
 0x413   : > { %v1483_v6 = vmul.f32 %v1474_v24, %v2623_v44  ;;  %v1480_v53 = vsel %vm603_vm3, %v1471_v12, %v3422_v56 }
 0x414   : > { %v1441_v26 = vpop.permute.xlu0 %1440 }
 0x415   : > { %v1445_v46 = vsel %vm586_vm2, %v3413_v5, %v1441_v26  ;;  %v1449_v16 = vsel %vm586_vm2, %v1441_v26, %v3413_v5  ;;  %1751 = vmatpush1.bf16.msra.mxu0 %v1624_v48  ;;  %v1479_v5 = vsel %vm603_vm3, %v3411_v17, %v3365_v31  ;;  %v1476_v31 = vsel %vm603_vm3, %v3422_v56, %v1471_v12 }
 0x416   : > { %v1457_v0 = vmul.f32 %v1445_v46, %v2616_v42  ;;  %v1495_v58 = vpop.permute.xlu1 %1494  ;;  %1752 = vmatprep.subr.bf16.mxu0 %v1627_v47  ;;  %v1456_v2 = vmul.f32 %v1449_v16, %v2613_v41  ;;  %v1484_v49 = vmul.f32 %v1479_v5, %v2620_v43  ;;  %v1631_v26 = vpack.c.bf16 %v1485_v54, %v1483_v6 }
 0x417   : > { %v1482_v47 = vmul.f32 %v1478_v30, %v2620_v43  ;;  %v1487_v36 = vmul.f32 %v1476_v31, %v2623_v44  ;;  %v1635_v56 = vpack.c.bf16 %v3225_v1, %v3221_v62  ;;  %v1634_v54 = vpack.c.bf16 %v3201_v37, %v3199_v32 }
 0x418   : > { %v3541_v4 = vpop.permute.xlu0 %1524  ;;  %v1629_v35 = vpack.c.bf16 %v1457_v0, %v1455_v57  ;;  %v1628_v17 = vpack.c.bf16 %v1456_v2, %v1454_v29  ;;  %v1486_v2 = vmul.f32 %v1480_v53, %v2620_v43  ;;  %v1637_v29 = vpack.c.bf16 %v3263_v7, %v3267_v27 }
 0x419   : > { %1753 = vmatpush1.bf16.msra.mxu0 %v1626_v3  ;;  %v1630_v57 = vpack.c.bf16 %v1484_v49, %v1482_v47  ;;  %v1636_v49 = vpack.c.bf16 %v3243_v8, %v3247_v34 }
 0x41a   : > { %v1503_v18 = vpop.permute.xlu1 %1502  ;;  %1754 = vmatprep.subr.bf16.mxu0 %v1629_v35 }
 0x41b   : > { %v1512_v6 = vsel %vm620_vm4, %v1503_v18, %v1495_v58  ;;  %v1508_v7 = vsel %vm620_vm4, %v1495_v58, %v1503_v18 }
 0x41c   : > { %v1473_v48 = vpop.permute.xlu0 %1472  ;;  %v1519_v27 = vmul.f32 %v1512_v6, %v2639_v52 }
 0x41d   : > { %v1477_v33 = vsel %vm603_vm3, %v3417_v55, %v1473_v48  ;;  %v1481_v61 = vsel %vm603_vm3, %v1473_v48, %v3417_v55  ;;  %1755 = vmatpush1.bf16.msra.mxu0 %v1628_v17 }
 0x41e   : > { %v1489_v46 = vmul.f32 %v1477_v33, %v2623_v44  ;;  %v1523_v16 = vpop.permute.xlu1 %1522  ;;  %1756 = vmatprep.subr.bf16.mxu0 %v1631_v26  ;;  %v1488_v40 = vmul.f32 %v1481_v61, %v2620_v43  ;;  %v1518_v26 = vmul.f32 %v1508_v7, %v2636_v51 }
 0x420   : > { %v1533_v0 = vpop.permute.xlu0 %1532  ;;  %v1633_v24 = vpack.c.bf16 %v1489_v46, %v1487_v36  ;;  %v1632_v3 = vpack.c.bf16 %v1488_v40, %v1486_v2 }
 0x421   : > { %1757 = vmatpush1.bf16.msra.mxu0 %v1630_v57  ;;  %v1543_v31 = vsel %vm637_vm5, %v1533_v0, %v3541_v4  ;;  %v1539_v9 = vsel %vm637_vm5, %v3541_v4, %v1533_v0 }
 0x422   : > { %v1531_v55 = vpop.permute.xlu1 %1530  ;;  %1758 = vmatprep.subr.bf16.mxu0 %v1633_v24  ;;  %v1549_v28 = vmul.f32 %v1543_v31, %v2670_v11  ;;  %v1548_v46 = vmul.f32 %v1539_v9, %v2667_v10 }
 0x423   : > { %v1542_v1 = vsel %vm637_vm5, %v1531_v55, %v1523_v16 }
 0x424   : > { %v1529_v5 = vpop.permute.xlu0 %1528  ;;  %v1547_v58 = vmul.f32 %v1542_v1, %v2670_v11 }
 0x425   : > { %1759 = vmatpush1.bf16.msra.mxu0 %v1632_v3 }
 0x426   : > { %v1527_v12 = vpop.permute.xlu1 %1526  ;;  %1760 = vmatprep.subr.bf16.mxu0 %v1635_v56  ;;  %v1643_v36 = vpack.c.bf16 %v1549_v28, %v1547_v58 }
 0x428   : > { %v1557_v35 = vpop.permute.xlu0 %1556 }
 0x429   : > { %1761 = vmatpush1.bf16.msra.mxu0 %v1634_v54 }
 0x42a   : > { %v1535_v30 = vpop.permute.xlu1 %1534  ;;  %1762 = vmatprep.subr.bf16.mxu0 %v1637_v29 }
 0x42b   : > { %v1544_v33 = vsel %vm637_vm5, %v1535_v30, %v1527_v12  ;;  %v1540_v4 = vsel %vm637_vm5, %v1527_v12, %v1535_v30 }
 0x42c   : > { %v1505_v62 = vpop.permute.xlu0 %1504  ;;  %v1550_v12 = vmul.f32 %v1540_v4, %v2667_v10 }
 0x42d   : > { %v1509_v32 = vsel %vm620_vm4, %v3503_v63, %v1505_v62  ;;  %v1513_v37 = vsel %vm620_vm4, %v1505_v62, %v3503_v63  ;;  %1763 = vmatpush1.bf16.msra.mxu0 %v1636_v49  ;;  %v1538_v63 = vsel %vm637_vm5, %v1523_v16, %v1531_v55  ;;  %v1551_v16 = vmul.f32 %v1544_v33, %v2670_v11  ;;  %v2361_v33 = vld [vmem:[%s3771_s10] ss:$12 sps:$4 sm:$0xff]  }
 0x42e   : > { %v1521_v8 = vmul.f32 %v1513_v37, %v2639_v52  ;;  %v1555_v34 = vpop.permute.xlu1 %1554  ;;  %1764 = vmatprep.subr.bf16.mxu0 %v1639_v60  ;;  %v1520_v17 = vmul.f32 %v1509_v32, %v2636_v51  ;;  %v1546_v47 = vmul.f32 %v1538_v63, %v2667_v10 }
 0x430   : > { %v1565_v18 = vpop.permute.xlu0 %1564  ;;  %v1641_v48 = vpack.c.bf16 %v1521_v8, %v1519_v27  ;;  %v1640_v61 = vpack.c.bf16 %v1520_v17, %v1518_v26  ;;  %v1642_v2 = vpack.c.bf16 %v1548_v46, %v1546_v47  ;;  %v3662_v46 = vld [vmem:[%s3763_s2 + $0x10] ss:$0 sm:$0xff] }
 0x431   : > { %1765 = vmatpush1.bf16.msra.mxu0 %v1638_v25  ;;  %v1575_v0 = vsel %vm654_vm6, %v1565_v18, %v1557_v35  ;;  %v1571_v54 = vsel %vm654_vm6, %v1557_v35, %v1565_v18 }
 0x432   : > { %v1563_v60 = vpop.permute.xlu1 %1562  ;;  %1766 = vmatprep.subr.bf16.mxu0 %v1641_v48  ;;  %v1581_v29 = vmul.f32 %v1575_v0, %v2678_v15  ;;  %v1580_v37 = vmul.f32 %v1571_v54, %v2675_v14  ;;  %v2366_v0 = vld [vmem:[%s3771_s10 + $0x18] ss:$12 sps:$4 sm:$0xff]  }
 0x433   : > { %v1574_v45 = vsel %vm654_vm6, %v1563_v60, %v1555_v34  ;;  %v1570_v55 = vsel %vm654_vm6, %v1555_v34, %v1563_v60  ;;  %v3834_v54 = vld [vmem:[#allocation2_spill] sm:$0xff] }
 0x434   : > { %v1537_v53 = vpop.permute.xlu0 %1536  ;;  %v1579_v3 = vmul.f32 %v1574_v45, %v2678_v15  ;;  %v1578_v6 = vmul.f32 %v1570_v55, %v2675_v14 }
 0x435   : > { %v1541_v50 = vsel %vm637_vm5, %v1529_v5, %v1537_v53  ;;  %v1545_v25 = vsel %vm637_vm5, %v1537_v53, %v1529_v5  ;;  %1767 = vmatpush1.bf16.msra.mxu0 %v1640_v61 }
 0x436   : > { %v1553_v40 = vmul.f32 %v1545_v25, %v2670_v11  ;;  %v1559_v57 = vpop.permute.xlu1 %1558  ;;  %1768 = vmatprep.subr.bf16.mxu0 %v1643_v36  ;;  %v1552_v24 = vmul.f32 %v1541_v50, %v2667_v10  ;;  %v1647_v32 = vpack.c.bf16 %v1581_v29, %v1579_v3  ;;  %v1646_v63 = vpack.c.bf16 %v1580_v37, %v1578_v6  ;;  %v2364_v36 = vld [vmem:[%s3771_s10 + $0x1c] ss:$12 sps:$4 sm:$0xff]   ;;  %v3668_v50 = vld [vmem:[%s3763_s2 + $0x18] ss:$0 sm:$0xff] }
 0x437   : > { %v1670_v29 = vsub.s32 4, %v3834_v54 }
 0x438   : > { %v1561_v5 = vpop.permute.xlu0 %1560  ;;  %v1645_v56 = vpack.c.bf16 %v1553_v40, %v1551_v16  ;;  %v1644_v62 = vpack.c.bf16 %v1552_v24, %v1550_v12 }
 0x439   : > { %1769 = vmatpush1.bf16.msra.mxu0 %v1642_v2 }
 0x43a   : > { %v1567_v30 = vpop.permute.xlu1 %1566  ;;  %1770 = vmatprep.subr.bf16.mxu0 %v1645_v56 }
 0x43b   : > { %v1576_v49 = vsel %vm654_vm6, %v1567_v30, %v1559_v57  ;;  %v1572_v27 = vsel %vm654_vm6, %v1559_v57, %v1567_v30 }
 0x43c   : > { %v1569_v1 = vpop.permute.xlu0 %1568  ;;  %v1583_v8 = vmul.f32 %v1576_v49, %v2678_v15  ;;  %v1582_v48 = vmul.f32 %v1572_v27, %v2675_v14 }
 0x43d   : > { %v1573_v7 = vsel %vm654_vm6, %v1561_v5, %v1569_v1  ;;  %v1577_v35 = vsel %vm654_vm6, %v1569_v1, %v1561_v5  ;;  %1771 = vmatpush1.bf16.msra.mxu0 %v1644_v62 }
 0x43e   : > { %v1585_v34 = vmul.f32 %v1577_v35, %v2678_v15  ;;  %v1587_v31 = vpop.permute.xlu1 %1586  ;;  %1772 = vmatprep.subr.bf16.mxu0 %v1647_v32  ;;  %v1584_v17 = vmul.f32 %v1573_v7, %v2675_v14 }
 0x440   : > { %v1589_v58 = vpop.permute.xlu0 %1588  ;;  %v1649_v18 = vpack.c.bf16 %v1585_v34, %v1583_v8  ;;  %v1648_v60 = vpack.c.bf16 %v1584_v17, %v1582_v48 }
 0x441   : > { %1773 = vmatpush1.bf16.msra.mxu0 %v1646_v63 }
 0x442   : > { %v1595_v26 = vpop.permute.xlu1 %1594  ;;  %1774 = vmatprep.subr.bf16.mxu0 %v1649_v18  ;;  %v2380_v18 = vld [vmem:[%s3763_s2] sm:$0xff] }
 0x443   : > { %v1602_v9 = vsel %vm671_vm7, %v1587_v31, %v1595_v26  ;;  %v1606_v28 = vsel %vm671_vm7, %v1595_v26, %v1587_v31  ;;  %v1671_v48 = vrot.slane %v2380_v18, %v1670_v29 }
 0x444   : > { %v1597_v47 = vpop.permute.xlu0 %1596  ;;  %v1610_v45 = vmul.f32 %v3662_v46, %v1602_v9  ;;  %v1611_v25 = vmul.f32 %v3668_v50, %v1606_v28 }
 0x445   : > { %v1603_v61 = vsel %vm671_vm7, %v1589_v58, %v1597_v47  ;;  %v1607_v53 = vsel %vm671_vm7, %v1597_v47, %v1589_v58  ;;  %1775 = vmatpush1.bf16.msra.mxu0 %v1648_v60 }
 0x446   : > { %v1612_v4 = vmul.f32 %v3662_v46, %v1603_v61  ;;  %v1613_v16 = vmul.f32 %v3668_v50, %v1607_v53 }
 0x448   : > { %v1650_v40 = vpack.c.bf16 %v1612_v4, %v1610_v45  ;;  %v1651_v57 = vpack.c.bf16 %v1613_v16, %v1611_v25  ;;  %1777 = vmatmul.mubr.bf16.vlgmr.msra.gmra.mrb[0].mxu0 %v2361_v33  ;;  %v1591_v24 = vpop.permute.xlu0 %1590  ;;  %v2368_v33 = vld [vmem:[%s3771_s10 + $0x20] ss:$12 sps:$4 sm:$0xff]   ;;  %v3836_v4 = vld [vmem:[#allocation4_spill] sm:$0xff]  ;;  %v3837_v16 = vld [vmem:[#allocation5_spill] sm:$0xff] }
 0x449   : > { %1786 = vmatprep.mubr.bf16.mxu0 %v2364_v36 }
 0x44a   : > { %1797 = vmatprep.subr.bf16.mxu0 %v1651_v57  ;;  %v3841_v57 = vld [vmem:[#allocation9_spill] sm:$0xff] }
 0x44b   : > { %1798 = vmatpush1.bf16.msra.mxu0 %v1650_v40  ;;  %v3840_v40 = vld [vmem:[#allocation8_spill] sm:$0xff] }
 0x44c   : > { %v1599_v55 = vpop.permute.xlu0 %1598 }
 0x44d   : > { %v1604_v5 = vsel %vm671_vm7, %v1591_v24, %v1599_v55  ;;  %v1608_v56 = vsel %vm671_vm7, %v1599_v55, %v1591_v24 }
 0x44e   : > { %v1614_v30 = vmul.f32 %v3662_v46, %v1604_v5  ;;  %v1615_v6 = vmul.f32 %v3668_v50, %v1608_v56 }
 0x450   : > { %1787 = vmatmul.mubr.bf16.gmra.mrb[4].mxu0 %v2366_v0 }
 0x451   : > { %1829 = vmatprep.mubr.bf16.mxu0 %v3824_v19 }
 0x453   : > { %v1658_v2 = vpop.permute.xlu1 %1657 }
 0x454   : > { %v1661_v37 = vmul.f32 %v1658_v2, %v2589_v23  ;;  %v1663_v7 = vmul.f32 %v1658_v2, %v2583_v21  ;;  %v1660_v8 = vmul.f32 %v1658_v2, %v2586_v22  ;;  %v1662_v34 = vmul.f32 %v1658_v2, %v2580_v20  ;;  %v2379_v21 = vld [vmem:[%s3763_s2 + $0x8] sm:$0xff] }
 0x455   : > { %v1665_v17 = vmul.f32 %v1658_v2, %v2616_v42  ;;  %v1667_v63 = vmul.f32 %v1658_v2, %v2623_v44  ;;  %v1675_v23 = vrot.slane %v2379_v21, %v1670_v29  ;;  %v1664_v20 = vmul.f32 %v1658_v2, %v2613_v41 }
 0x456   : > { %v1687_v31 = vpack.c.bf16 %v1663_v7, %v1661_v37  ;;  %v1686_v22 = vpack.c.bf16 %v1662_v34, %v1660_v8  ;;  %v1666_v58 = vmul.f32 %v1658_v2, %v2620_v43  ;;  %v1679_v26 = vmul.f32 %v1658_v2, %v2639_v52 }
 0x457   : > { %v1593_v3 = vpop.permute.xlu1 %1592  ;;  %v1689_v42 = vpack.c.bf16 %v1667_v63, %v1665_v17  ;;  %v1677_v44 = vmul.f32 %v1675_v23, %v1658_v2  ;;  %v1676_v28 = vmul.f32 %v1671_v48, %v1658_v2  ;;  %v1678_v41 = vmul.f32 %v1658_v2, %v2636_v51 }
 0x458   : > { %v1688_v9 = vpack.c.bf16 %v1666_v58, %v1664_v20  ;;  %v1681_v60 = vmul.f32 %v1658_v2, %v2670_v11  ;;  %v1683_v47 = vmul.f32 %v1658_v2, %v2678_v15  ;;  %v1680_v61 = vmul.f32 %v1658_v2, %v2667_v10 }
 0x459   : > { %v1691_v43 = vpack.c.bf16 %v1679_v26, %v1677_v44  ;;  %v1690_v52 = vpack.c.bf16 %v1678_v41, %v1676_v28  ;;  %v1682_v53 = vmul.f32 %v1658_v2, %v2675_v14  ;;  %v1685_v51 = vmul.f32 %v3668_v50, %v1658_v2  ;;  %v2369_v14 = vld [vmem:[%s3770_s9] sm:$0xff]  }
 0x45a   : > { %v1693_v36 = vpack.c.bf16 %v1683_v47, %v1681_v60  ;;  %v1684_v11 = vmul.f32 %v3662_v46, %v1658_v2 }
 0x45b   : > { %v1601_v12 = vpop.permute.xlu1 %1600  ;;  %v1692_v15 = vpack.c.bf16 %v1682_v53, %v1680_v61  ;;  %v1695_v45 = vpack.c.bf16 %v1685_v51, %v1685_v51 }
 0x45c   : > { %v1605_v49 = vsel %vm671_vm7, %v1593_v3, %v1601_v12  ;;  %v1609_v62 = vsel %vm671_vm7, %v1601_v12, %v1593_v3  ;;  %v1694_v25 = vpack.c.bf16 %v1684_v11, %v1684_v11 }
 0x45d   : > { %v1616_v1 = vmul.f32 %v3662_v46, %v1605_v49  ;;  %v1617_v32 = vmul.f32 %v3668_v50, %v1609_v62  ;;  %v2370_v46 = vld [vmem:[%s3770_s9 + $0x8] sm:$0xff]   ;;  %v2013_v3 = vpop.permute.xlu0 %2012 }
 0x45e   : > { %v1867_v10 = vsel %vm715_vm8, %v1694_v25, 0  ;;  %v3835_v50 = vld [vmem:[#allocation3_spill] sm:$0xff] }
 0x45f   : > { %v1652_v35 = vpack.c.bf16 %v1616_v1, %v1614_v30  ;;  %v1653_v27 = vpack.c.bf16 %v1617_v32, %v1615_v6  ;;  %v2018_v5 = vpop.permute.xlu1 %2017 }
 0x461   : > { %1799 = vmatprep.subr.bf16.mxu0 %v1653_v27  ;;  %v2045_v56 = vpop.permute.xlu0 %2044 }
 0x462   : > { %1800 = vmatpush1.bf16.msra.mxu0 %v1652_v35 }
 0x463   : > { %1872 = vmatprep.subr.bf16.mxu0 %v1687_v31  ;;  %v2050_v12 = vpop.permute.xlu1 %2049 }
 0x465   : > { %2264 = vmatmul.mubr.msk.bf16.vlgmr.msra.gmra.mrb[0].mxu0 %vm1177_vm10, %v2367_v13  ;;  %v2023_v54 = vpop.permute.xlu0 %2022 }
 0x466   : > { %1873 = vmatpush1.bf16.msra.mxu0 %v1686_v22  ;;  %1839 = vmatprep.mubr.bf16.mxu0 %v3824_v19 }
 0x467   : > { %1874 = vmatprep.subr.bf16.mxu0 %v1689_v42  ;;  %v2028_v29 = vpop.permute.xlu1 %2027 }
 0x469   : > { %v2055_v35 = vpop.permute.xlu0 %2054 }
 0x46a   : > { %1875 = vmatpush1.bf16.msra.mxu0 %v1688_v9 }
 0x46b   : > { %1876 = vmatprep.subr.bf16.mxu0 %v1691_v43  ;;  %v2060_v13 = vpop.permute.xlu1 %2059 }
 0x46d   : > { %2265 = vmatmul.mubr.msk.bf16.gmra.mrb[4].mxu0 %vm1177_vm10, %v2368_v33 }
 0x46e   : > { %1877 = vmatpush1.bf16.msra.mxu0 %v1690_v52  ;;  %1904 = vmatprep.mubr.bf16.mxu0 %v3824_v19 }
 0x46f   : > { %1878 = vmatprep.subr.bf16.mxu0 %v1693_v36 }
 0x472   : > { %1879 = vmatpush1.bf16.msra.mxu0 %v1692_v15 }
 0x473   : > { %2268 = vmatprep.subr.msk.bf16.mxu0 %vm715_vm8, %v1695_v45 }
 0x476   : > { %1881 = vmatpush1.bf16.msra.mxu0 %v1867_v10  ;;  %v2078_v10 = vld [vmem:[%s3775_s14] sm:$0x7] }
 0x477   : > { %1945 = vmatprep.subr.bf16.mxu0 %v2606_v38  ;;  %v3838_v38 = vld [vmem:[#allocation6_spill] sm:$0xff] }
 0x479   : > { %2269 = vmatmul.mubr.msk.bf16.vlgmr.msra.gmra.mrb[0].mxu0 %vm708_vm9, %v2369_v14  ;;  %v2083_v14 = vpop.permute.xlu0 %2082 }
 0x47a   : > { %1946 = vmatpush1.bf16.msra.mxu0 %v2608_v39  ;;  %1914 = vmatprep.mubr.bf16.mxu0 %v3824_v19  ;;  %v3839_v39 = vld [vmem:[#allocation7_spill] sm:$0xff] }
 0x47b   : > { %1947 = vmatprep.subr.bf16.mxu0 %v2645_v59  ;;  %v2372_v59 = vld [vmem:[%s3772_s11] sm:$0xff]  }
 0x47e   : > { %1948 = vmatpush1.bf16.msra.mxu0 %v3835_v50 }
 0x47f   : > { %1949 = vmatprep.subr.bf16.mxu0 %v3836_v4 }
 0x481   : > { %2270 = vmatmul.mubr.msk.bf16.gmra.mrb[4].mxu0 %vm708_vm9, %v2370_v46 }
 0x482   : > { %1950 = vmatpush1.bf16.msra.mxu0 %v3837_v16  ;;  %1977 = vmatprep.mubr.bf16.mxu0 %v3824_v19  ;;  %v2398_v19 = vmov 0.0  }
 0x483   : > { %1951 = vmatprep.subr.bf16.mxu0 %v3838_v38  ;;  %2152 = vmatprep.mubr.f32.mxu1 %v2398_v19 }
 0x486   : > { %1952 = vmatpush1.bf16.msra.mxu0 %v3839_v39 }
 0x487   : > { %2273 = vmatprep.subr.msk.bf16.mxu0 %vm715_vm8, %v3840_v40 }
 0x48a   : > { %1954 = vmatpush1.bf16.msra.mxu0 %v3841_v57 }
 0x48d   : > { %2274 = vmatmul.mubr.msk.bf16.vlgmr.msra.gmra.mrb[0].mxu0 %vm708_vm9, %v2372_v59 }
 0x4bc   : > { %v1989_v0 = vpop.f32.mrb[16].mxu1 }
 0x4bd   : > { %v1991_v24 = vpop.f32.mrb[17].mxu1 }
 0x4be   : > { %v1993_v2 = vpop.f32.mrb[18].mxu1 }
 0x4bf   : > { %v1995_v55 = vpop.f32.mrb[19].mxu1 }
 0x554   : > { %v1916_v30 = vpop.f32.mrb[4].mxu0 }
 0x555   : > { %v2299_v6 = vadd.f32 %v1989_v0, %v1916_v30  ;;  %v1918_v49 = vpop.f32.mrb[5].mxu0 }
 0x556   : > { %v2300_v62 = vadd.f32 %v1991_v24, %v1918_v49  ;;  %v1920_v1 = vpop.f32.mrb[6].mxu0 }
 0x557   : > { %v2034_v32 = vmul.f32 %v2299_v6, %v2023_v54  ;;  %v2301_v37 = vadd.f32 %v1993_v2, %v1920_v1  ;;  %v1922_v7 = vpop.f32.mrb[7].mxu0 }
 0x558   : > { %v2035_v27 = vmul.f32 %v2300_v62, %v2023_v54  ;;  %v2302_v8 = vadd.f32 %v1995_v55, %v1922_v7 }
 0x559   : > { %v2066_v34 = vadd.f32 %v2055_v35, %v2034_v32  ;;  %v2036_v31 = vmul.f32 %v2301_v37, %v2028_v29 }
 0x55a   : > { %v2067_v17 = vadd.f32 %v2055_v35, %v2035_v27  ;;  %v2037_v63 = vmul.f32 %v2302_v8, %v2028_v29 }
 0x55b   : > { %v2068_v21 = vadd.f32 %v2060_v13, %v2036_v31  ;;  %v2074_v22 = vmax.f32 %v2066_v34, 0.0 }
 0x55c   : > { %v2069_v23 = vadd.f32 %v2060_v13, %v2037_v63  ;;  %v2075_v58 = vmax.f32 %v2067_v17, 0.0 }
 0x55d   : > { %v2076_v20 = vmax.f32 %v2068_v21, 0.0 }
 0x55e   : > { %v2077_v18 = vmax.f32 %v2069_v23, 0.0 }
 0x55f   : > { %v2287_v48 = vpack.c.bf16 %v2076_v20, %v2074_v22 }
 0x560   : > { %v1979_v42 = vpop.f32.mrb[0].mxu0  ;;  %v2285_v44 = vpack.c.bf16 %v2077_v18, %v2075_v58 }
 0x561   : > { %v2030_v26 = vmul.f32 %v2013_v3, %v1979_v42  ;;  %v1981_v9 = vpop.f32.mrb[1].mxu0 }
 0x562   : > { %v2031_v28 = vmul.f32 %v2013_v3, %v1981_v9  ;;  %v1983_v41 = vpop.f32.mrb[2].mxu0 }
 0x563   : > { %v2062_v43 = vadd.f32 %v2045_v56, %v2030_v26  ;;  %v2032_v60 = vmul.f32 %v2018_v5, %v1983_v41  ;;  %v1985_v47 = vpop.f32.mrb[3].mxu0 }
 0x564   : > { %v2063_v33 = vadd.f32 %v2045_v56, %v2031_v28  ;;  %v2033_v52 = vmul.f32 %v2018_v5, %v1985_v47 }
 0x565   : > { %v2064_v61 = vadd.f32 %v2050_v12, %v2032_v60  ;;  %v2070_v36 = vmax.f32 %v2062_v43, 0.0 }
 0x566   : > { %v2065_v53 = vadd.f32 %v2050_v12, %v2033_v52  ;;  %v2071_v11 = vmax.f32 %v2063_v33, 0.0 }
 0x567   : > { %v2072_v51 = vmax.f32 %v2064_v61, 0.0 }
 0x568   : > { %v2073_v15 = vmax.f32 %v2065_v53, 0.0 }
 0x569   : > { %v2283_v45 = vpack.c.bf16 %v2072_v51, %v2070_v36 }
 0x56a   : > { %v2281_v25 = vpack.c.bf16 %v2073_v15, %v2071_v11 }
 0x56c   : > { %2282 = vmatprep.subr.bf16.mxu1 %v2281_v25 }
 0x56d   : > { %2284 = vmatpush1.bf16.msra.mxu1 %v2283_v45 }
 0x56e   : > { %2286 = vmatprep.subr.bf16.mxu1 %v2285_v44 }
 0x571   : > { %2288 = vmatpush1.bf16.msra.mxu1 %v2287_v48 }
 0x574   : > { %2276 = vmatmul.mubr.msk.f32.vlgmr.msra.gmra.mrb[20].mxu1 %vm1177_vm10, %v2078_v10 }
 0x647   : > { %v2154_v46 = vpop.f32.mrb[20].mxu1 }
 0x648   : > { %v2155_v50 = vadd.f32 %v2154_v46, %v2083_v14  ;;  %v2156_v4 = vpop.f32.mrb[21].mxu1 }
 0x649   : > { %v2157_v16 = vadd.f32 %v2156_v4, %v2083_v14 }
 0x64a   : > { %2373 = vtanh.f32 %v2155_v50 }
 0x64b   : > { %2375 = vtanh.f32 %v2157_v16 }
 0x654   : > { %v2374_v38 = vpop.eup %2373 }
 0x655   : > { %v2376_v39 = vpop.eup %2375 }
 0x656   : > { %v2163_v40 = vcombine.low %v2374_v38, %v2376_v39 }
 0x658   : > { %2165 = vst [vmem:[%s538_s24] sm:$0x77] %v2163_v40 }
 0x659 PF: > { %s26_s21 = sadd.s32 1, %s2387_s21  }
 0x65a   : > { %p23_p4 = scmp.ge.s32.totalorder %s26_s21, 4  }
 0x65c   :  { %25 = sbr.rel (!%p23_p4) target bundleno = 2 (0x2), region = 117 }

</bundles_post_ra>
